<compile_context>
chip_gen: v5e
topology: v5e:2x2
jax: 0.10.0
libtpu: 0.0.40
codegen_flags: <defaults>
</compile_context>

<pallas_src>
from functools import partial

import jax
import jax.numpy as jnp
from jax import lax
from jax.experimental import pallas as pl
from jax.experimental.pallas import tpu as pltpu


def _round_up(x, m):
    return ((x + m - 1) // m) * m


# ----------------------------------------------------------------------------- kernel
def _lstm_classify_kernel(x_ref, mask_ref, w_ih_ref, w_hh_ref, b_ref,
                          w_out_ref, b_out_ref, out_ref):
    Bp = out_ref.shape[0]
    SBp = x_ref.shape[0]
    S = SBp // Bp
    Hp = w_hh_ref.shape[0]          # padded hidden (multiple of 128)

    # ---- Phase 1: input projection for ALL timesteps in one MXU call (bias folded in).
    # x is time-major, flattened: row t*Bp + b  ->  (token t of sequence b).
    gx = (jnp.dot(x_ref[...], w_ih_ref[...], preferred_element_type=jnp.float32)
          + b_ref[...])                                       # (S*Bp, 4*Hp), layout [i,f,o,g]

    w_hh = w_hh_ref[...]                                      # resident, hoisted
    mask = mask_ref[...]                                      # (S*Bp, Hp) f32 in {0,1}

    h = jnp.zeros((Bp, Hp), jnp.float32)
    c = jnp.zeros((Bp, Hp), jnp.float32)

    # ---- Phase 2: fully-unrolled time recurrence (S is small & static).
    # Only h @ W_hh + the gate nonlinearities sit on the serial critical path.
    # TODO(synk): for large S switch to lax.fori_loop over gx chunks (vreg pressure / code size).
    for t in range(S):
        gates = gx[t * Bp:(t + 1) * Bp, :] + jnp.dot(
            h, w_hh, preferred_element_type=jnp.float32)      # (Bp, 4*Hp), 8-sublane aligned slice

        # Gate layout [i, f, o, g]: one sigmoid over a contiguous (Bp, 3*Hp) slab, one tanh.
        ifo = jax.nn.sigmoid(gates[:, :3 * Hp])
        g_g = jnp.tanh(gates[:, 3 * Hp:])
        i_g = ifo[:, 0 * Hp:1 * Hp]
        f_g = ifo[:, 1 * Hp:2 * Hp]
        o_g = ifo[:, 2 * Hp:3 * Hp]

        c_new = f_g * c + i_g * g_g
        h_new = o_g * jnp.tanh(c_new)

        # pack_padded_sequence semantics: rows with t >= seq_len keep the frozen state.
        # mask is exactly 0 or 1, so the blend is exact (no select / compare per step).
        m = mask[t * Bp:(t + 1) * Bp, :]
        h = h + m * (h_new - h)
        c = c + m * (c_new - c)

    # ---- Phase 3: ReLU -> Dropout(eval = identity) -> Linear, lane-dense (Bp, Np) store.
    # TODO(synk): nn.Dropout is identity in eval mode; no PRNG masking implemented here.
    relu_h = jnp.maximum(h, 0.0)
    out_ref[...] = (jnp.dot(relu_h, w_out_ref[...], preferred_element_type=jnp.float32)
                    + b_out_ref[...]).astype(out_ref.dtype)


# --------------------------------------------------------------------- one-time param prep
def prepare_params(params):
    """One-time padding / gate-reorder of the weights (hoisted out of the per-call path).

    PyTorch LSTM gate order is [i, f, g, o]; kernel layout is [i, f, o, g] so the three
    sigmoid gates form one contiguous (.., 3*Hp) slab.  Hidden dim and ntags are
    zero-padded to 128 so every gate slice / the output store is a lane-aligned 128-wide
    tile.  NOTE: padded hidden lanes provably stay 0 only because the padded bias is
    exactly 0 (tanh(0)=0 keeps c,h at 0); do not pad with a nonzero forget-gate bias.
    """
    f32 = jnp.float32
    E, H4 = params["w_ih_t"].shape
    H = H4 // 4
    ntags = params["w_out_t"].shape[1]
    Hp = _round_up(H, 128)
    Np = _round_up(ntags, 128)
    perm = jnp.array([0, 1, 3, 2], dtype=jnp.int32)     # [i,f,g,o] -> [i,f,o,g]

    def pack(w):                                        # (X, 4H) -> (X, 4Hp), reordered + padded
        X = w.shape[0]
        w4 = w.reshape(X, 4, H)[:, perm, :]
        return jnp.zeros((X, 4, Hp), f32).at[:, :, :H].set(w4).reshape(X, 4 * Hp)

    w_ih_p = pack(params["w_ih_t"].astype(f32))
    w_hh_p = jnp.zeros((Hp, 4 * Hp), f32).at[:H, :].set(pack(params["w_hh_t"].astype(f32)))
    b_p = pack(params["bias"].astype(f32).reshape(1, 4 * H))
    w_out_p = jnp.zeros((Hp, Np), f32).at[:H, :ntags].set(params["w_out_t"].astype(f32))
    b_out_p = jnp.zeros((1, Np), f32).at[0, :ntags].set(params["b_out"].astype(f32))

    return dict(embedding=params["embedding"].astype(f32),
                w_ih_p=w_ih_p, w_hh_p=w_hh_p, b_p=b_p,
                w_out_p=w_out_p, b_out_p=b_out_p)


# ----------------------------------------------------------------------------- forward
@partial(jax.jit, static_argnames=("ntags",))
def classify_forward(token_ids, seq_lens, prepped, *, ntags):
    """token_ids: (B, S) int32, seq_lens: (B,) int32 -> logits (B, ntags)."""
    embedding = prepped["embedding"]
    B, S = token_ids.shape
    E = embedding.shape[1]
    Hp = prepped["w_hh_p"].shape[0]
    Np = prepped["w_out_p"].shape[1]
    Bp = _round_up(B, 8)            # sublane-align the batch so per-step slices are full vregs
    f32 = jnp.float32

    # Tiny int32 padding only: pad rows get token id 0 and seq_len 0 (state frozen at zero).
    ids_p = jnp.zeros((Bp, S), jnp.int32).at[:B, :].set(token_ids.astype(jnp.int32))
    lens_p = jnp.zeros((Bp,), jnp.int32).at[:B].set(seq_lens.astype(jnp.int32))

    # Time-major gather directly: (S, Bp) ids -> (S, Bp, E) -> (S*Bp, E). No f32 transpose.
    x2d = jnp.take(embedding, ids_p.T, axis=0).reshape(S * Bp, E)

    # Precompute keep masks for every timestep once (no per-step compare/broadcast in-kernel).
    keep = (jnp.arange(S, dtype=jnp.int32)[:, None] < lens_p[None, :]).astype(f32)   # (S, Bp)
    mask = jnp.broadcast_to(keep[:, :, None], (S, Bp, Hp)).reshape(S * Bp, Hp)

    flops = 2 * S * Bp * E * 4 * Hp + 2 * S * Bp * Hp * 4 * Hp + 2 * Bp * Hp * Np
    transc = 5 * S * Bp * Hp
    nbytes = 4 * (x2d.size + mask.size + prepped["w_ih_p"].size + prepped["w_hh_p"].size
                  + prepped["b_p"].size + prepped["w_out_p"].size + prepped["b_out_p"].size
                  + Bp * Np)

    # Gridless call: every operand is a single whole-array VMEM-resident block (<1 MiB total;
    # fits the scoped default on v5e/v6e/v7x — time-tiling only needed for much larger S*B).
    vmem = pl.BlockSpec(memory_space=pltpu.MemorySpace.VMEM)
    out_padded = pl.pallas_call(
        _lstm_classify_kernel,
        out_shape=jax.ShapeDtypeStruct((Bp, Np), f32),
        in_specs=[vmem] * 7,
        out_specs=vmem,
        cost_estimate=pl.CostEstimate(flops=flops, transcendentals=transc,
                                      bytes_accessed=nbytes),
    )(x2d, mask, prepped["w_ih_p"], prepped["w_hh_p"], prepped["b_p"],
      prepped["w_out_p"], prepped["b_out_p"])

    return out_padded[:B, :ntags]


# ----------------------------------------------------------------------------- reference
def classify_reference(token_ids, seq_lens, params):
    """Pure-JAX reference of the same forward pass (for correctness check)."""
    embeds = jnp.take(params["embedding"], token_ids, axis=0)   # (B, S, E)
    B, S, E = embeds.shape
    H = params["w_hh_t"].shape[0]

    def step(carry, t):
        h, c = carry
        x_t = embeds[:, t, :]
        gates = x_t @ params["w_ih_t"] + h @ params["w_hh_t"] + params["bias"]
        i_g = jax.nn.sigmoid(gates[:, 0 * H:1 * H])
        f_g = jax.nn.sigmoid(gates[:, 1 * H:2 * H])
        g_g = jnp.tanh(gates[:, 2 * H:3 * H])
        o_g = jax.nn.sigmoid(gates[:, 3 * H:4 * H])
        c_new = f_g * c + i_g * g_g
        h_new = o_g * jnp.tanh(c_new)
        mask = (t < seq_lens)[:, None]
        return (jnp.where(mask, h_new, h), jnp.where(mask, c_new, c)), None

    (h, _), _ = lax.scan(step,
                         (jnp.zeros((B, H), jnp.float32),
                          jnp.zeros((B, H), jnp.float32)),
                         jnp.arange(S))
    relu_h = jnp.maximum(h, 0.0)
    return relu_h @ params["w_out_t"] + params["b_out"]


def make_params(key, vocab_size, emb_dim, hidden_dim, ntags):
    ks = jax.random.split(key, 6)
    # xavier_uniform for the embedding table (as in the PyTorch __init__)
    limit = jnp.sqrt(6.0 / (vocab_size + emb_dim))
    embedding = jax.random.uniform(ks[0], (vocab_size, emb_dim),
                                   jnp.float32, -limit, limit)
    # LSTM params (PyTorch default: U(-1/sqrt(H), 1/sqrt(H))), stored transposed
    s = 1.0 / jnp.sqrt(hidden_dim)
    w_ih_t = jax.random.uniform(ks[1], (emb_dim, 4 * hidden_dim), jnp.float32, -s, s)
    w_hh_t = jax.random.uniform(ks[2], (hidden_dim, 4 * hidden_dim), jnp.float32, -s, s)
    bias = jax.random.uniform(ks[3], (4 * hidden_dim,), jnp.float32, -s, s)  # b_ih + b_hh folded
    # Linear(hidden_dim -> ntags), stored transposed
    so = 1.0 / jnp.sqrt(hidden_dim)
    w_out_t = jax.random.uniform(ks[4], (hidden_dim, ntags), jnp.float32, -so, so)
    b_out = jax.random.uniform(ks[5], (ntags,), jnp.float32, -so, so)
    return dict(embedding=embedding, w_ih_t=w_ih_t, w_hh_t=w_hh_t, bias=bias,
                w_out_t=w_out_t, b_out=b_out)


if __name__ == "__main__":
    VOCAB, EMB, HID, NTAGS = 50, 32, 32, 8
    B, S = 4, 8

    key = jax.random.PRNGKey(0)
    k_tok, k_par = jax.random.split(key)

    params = make_params(k_par, VOCAB, EMB, HID, NTAGS)
    prepped = prepare_params(params)          # one-time pad/reorder, NOT on the per-call path
    prepped = jax.tree_util.tree_map(jax.block_until_ready, prepped)

    token_ids = jax.random.randint(k_tok, (B, S), 0, VOCAB, dtype=jnp.int32)
    seq_lens = jnp.array([8, 6, 5, 3], dtype=jnp.int32)  # descending (pack_padded_sequence)

    out = jax.block_until_ready(
        classify_forward(token_ids, seq_lens, prepped, ntags=NTAGS))

    ref = jax.block_until_ready(classify_reference(token_ids, seq_lens, params))
    assert out.shape == (B, NTAGS)
    assert jnp.allclose(out, ref, atol=1e-5, rtol=1e-4), "mismatch vs JAX reference"

    print("KERNEL_OK")
</pallas_src>

<mosaic_0001>
module attributes {stable_mosaic.version = 11 : i64} {
  func.func @_lstm_classify_kernel(%arg0: memref<64x32xf32, #tpu.memory_space<vmem>>, %arg1: memref<64x128xf32, #tpu.memory_space<vmem>>, %arg2: memref<32x512xf32, #tpu.memory_space<vmem>>, %arg3: memref<128x512xf32, #tpu.memory_space<vmem>>, %arg4: memref<1x512xf32, #tpu.memory_space<vmem>>, %arg5: memref<128x128xf32, #tpu.memory_space<vmem>>, %arg6: memref<1x128xf32, #tpu.memory_space<vmem>>, %arg7: memref<8x128xf32, #tpu.memory_space<vmem>>) attributes {dimension_semantics = [], scalar_prefetch = 0 : i64, scratch_operands = 0 : i64, tpu.core_type = #tpu.core_type<tc>} {
    %c0 = arith.constant 0 : index
    %c0_0 = arith.constant 0 : index
    %0 = vector.load %arg0[%c0, %c0_0] : memref<64x32xf32, #tpu.memory_space<vmem>>, vector<64x32xf32>
    %c0_1 = arith.constant 0 : index
    %c0_2 = arith.constant 0 : index
    %1 = vector.load %arg2[%c0_1, %c0_2] : memref<32x512xf32, #tpu.memory_space<vmem>>, vector<32x512xf32>
    %cst = arith.constant dense<0.000000e+00> : vector<64x512xf32>
    %2 = tpu.matmul %0, %1, %cst {dimension_numbers = #tpu.dot_dimension_numbers<[1], [0], [0], [1], [0, 0, 1, 1], [], []>} : vector<64x32xf32>, vector<32x512xf32>, vector<64x512xf32> -> vector<64x512xf32>
    %c0_3 = arith.constant 0 : index
    %c0_4 = arith.constant 0 : index
    %3 = vector.load %arg4[%c0_3, %c0_4] : memref<1x512xf32, #tpu.memory_space<vmem>>, vector<1x512xf32>
    %4 = vector.broadcast %3 : vector<1x512xf32> to vector<64x512xf32>
    %5 = arith.addf %2, %4 : vector<64x512xf32>
    %c0_5 = arith.constant 0 : index
    %c0_6 = arith.constant 0 : index
    %6 = vector.load %arg3[%c0_5, %c0_6] : memref<128x512xf32, #tpu.memory_space<vmem>>, vector<128x512xf32>
    %c0_7 = arith.constant 0 : index
    %c0_8 = arith.constant 0 : index
    %7 = vector.load %arg1[%c0_7, %c0_8] : memref<64x128xf32, #tpu.memory_space<vmem>>, vector<64x128xf32>
    %cst_9 = arith.constant 0.000000e+00 : f32
    %8 = vector.broadcast %cst_9 : f32 to vector<8x128xf32>
    %cst_10 = arith.constant 0.000000e+00 : f32
    %9 = vector.broadcast %cst_10 : f32 to vector<8x128xf32>
    %10 = vector.extract_strided_slice %5 {offsets = [0, 0], sizes = [8, 512], strides = [1, 1]} : vector<64x512xf32> to vector<8x512xf32>
    %cst_11 = arith.constant dense<0.000000e+00> : vector<8x512xf32>
    %11 = tpu.matmul %8, %6, %cst_11 {dimension_numbers = #tpu.dot_dimension_numbers<[1], [0], [0], [1], [0, 0, 1, 1], [], []>} : vector<8x128xf32>, vector<128x512xf32>, vector<8x512xf32> -> vector<8x512xf32>
    %12 = arith.addf %10, %11 : vector<8x512xf32>
    %13 = vector.extract_strided_slice %12 {offsets = [0, 0], sizes = [8, 384], strides = [1, 1]} : vector<8x512xf32> to vector<8x384xf32>
    %14 = arith.negf %13 : vector<8x384xf32>
    %15 = math.exp %14 : vector<8x384xf32>
    %cst_12 = arith.constant 1.000000e+00 : f32
    %16 = vector.broadcast %cst_12 : f32 to vector<8x384xf32>
    %17 = arith.addf %16, %15 : vector<8x384xf32>
    %18 = arith.divf %16, %17 : vector<8x384xf32>
    %19 = vector.extract_strided_slice %12 {offsets = [0, 384], sizes = [8, 128], strides = [1, 1]} : vector<8x512xf32> to vector<8x128xf32>
    %20 = math.tanh %19 : vector<8x128xf32>
    %21 = vector.extract_strided_slice %18 {offsets = [0, 0], sizes = [8, 128], strides = [1, 1]} : vector<8x384xf32> to vector<8x128xf32>
    %22 = vector.extract_strided_slice %18 {offsets = [0, 128], sizes = [8, 128], strides = [1, 1]} : vector<8x384xf32> to vector<8x128xf32>
    %23 = vector.extract_strided_slice %18 {offsets = [0, 256], sizes = [8, 128], strides = [1, 1]} : vector<8x384xf32> to vector<8x128xf32>
    %24 = arith.mulf %22, %9 : vector<8x128xf32>
    %25 = arith.mulf %21, %20 : vector<8x128xf32>
    %26 = arith.addf %24, %25 : vector<8x128xf32>
    %27 = math.tanh %26 : vector<8x128xf32>
    %28 = arith.mulf %23, %27 : vector<8x128xf32>
    %29 = vector.extract_strided_slice %7 {offsets = [0, 0], sizes = [8, 128], strides = [1, 1]} : vector<64x128xf32> to vector<8x128xf32>
    %30 = arith.subf %28, %8 : vector<8x128xf32>
    %31 = arith.mulf %29, %30 : vector<8x128xf32>
    %32 = arith.addf %8, %31 : vector<8x128xf32>
    %33 = arith.subf %26, %9 : vector<8x128xf32>
    %34 = arith.mulf %29, %33 : vector<8x128xf32>
    %35 = arith.addf %9, %34 : vector<8x128xf32>
    %36 = vector.extract_strided_slice %5 {offsets = [8, 0], sizes = [8, 512], strides = [1, 1]} : vector<64x512xf32> to vector<8x512xf32>
    %cst_13 = arith.constant dense<0.000000e+00> : vector<8x512xf32>
    %37 = tpu.matmul %32, %6, %cst_13 {dimension_numbers = #tpu.dot_dimension_numbers<[1], [0], [0], [1], [0, 0, 1, 1], [], []>} : vector<8x128xf32>, vector<128x512xf32>, vector<8x512xf32> -> vector<8x512xf32>
    %38 = arith.addf %36, %37 : vector<8x512xf32>
    %39 = vector.extract_strided_slice %38 {offsets = [0, 0], sizes = [8, 384], strides = [1, 1]} : vector<8x512xf32> to vector<8x384xf32>
    %40 = arith.negf %39 : vector<8x384xf32>
    %41 = math.exp %40 : vector<8x384xf32>
    %cst_14 = arith.constant 1.000000e+00 : f32
    %42 = vector.broadcast %cst_14 : f32 to vector<8x384xf32>
    %43 = arith.addf %42, %41 : vector<8x384xf32>
    %44 = arith.divf %42, %43 : vector<8x384xf32>
    %45 = vector.extract_strided_slice %38 {offsets = [0, 384], sizes = [8, 128], strides = [1, 1]} : vector<8x512xf32> to vector<8x128xf32>
    %46 = math.tanh %45 : vector<8x128xf32>
    %47 = vector.extract_strided_slice %44 {offsets = [0, 0], sizes = [8, 128], strides = [1, 1]} : vector<8x384xf32> to vector<8x128xf32>
    %48 = vector.extract_strided_slice %44 {offsets = [0, 128], sizes = [8, 128], strides = [1, 1]} : vector<8x384xf32> to vector<8x128xf32>
    %49 = vector.extract_strided_slice %44 {offsets = [0, 256], sizes = [8, 128], strides = [1, 1]} : vector<8x384xf32> to vector<8x128xf32>
    %50 = arith.mulf %48, %35 : vector<8x128xf32>
    %51 = arith.mulf %47, %46 : vector<8x128xf32>
    %52 = arith.addf %50, %51 : vector<8x128xf32>
    %53 = math.tanh %52 : vector<8x128xf32>
    %54 = arith.mulf %49, %53 : vector<8x128xf32>
    %55 = vector.extract_strided_slice %7 {offsets = [8, 0], sizes = [8, 128], strides = [1, 1]} : vector<64x128xf32> to vector<8x128xf32>
    %56 = arith.subf %54, %32 : vector<8x128xf32>
    %57 = arith.mulf %55, %56 : vector<8x128xf32>
    %58 = arith.addf %32, %57 : vector<8x128xf32>
    %59 = arith.subf %52, %35 : vector<8x128xf32>
    %60 = arith.mulf %55, %59 : vector<8x128xf32>
    %61 = arith.addf %35, %60 : vector<8x128xf32>
    %62 = vector.extract_strided_slice %5 {offsets = [16, 0], sizes = [8, 512], strides = [1, 1]} : vector<64x512xf32> to vector<8x512xf32>
    %cst_15 = arith.constant dense<0.000000e+00> : vector<8x512xf32>
    %63 = tpu.matmul %58, %6, %cst_15 {dimension_numbers = #tpu.dot_dimension_numbers<[1], [0], [0], [1], [0, 0, 1, 1], [], []>} : vector<8x128xf32>, vector<128x512xf32>, vector<8x512xf32> -> vector<8x512xf32>
    %64 = arith.addf %62, %63 : vector<8x512xf32>
    %65 = vector.extract_strided_slice %64 {offsets = [0, 0], sizes = [8, 384], strides = [1, 1]} : vector<8x512xf32> to vector<8x384xf32>
    %66 = arith.negf %65 : vector<8x384xf32>
    %67 = math.exp %66 : vector<8x384xf32>
    %cst_16 = arith.constant 1.000000e+00 : f32
    %68 = vector.broadcast %cst_16 : f32 to vector<8x384xf32>
    %69 = arith.addf %68, %67 : vector<8x384xf32>
    %70 = arith.divf %68, %69 : vector<8x384xf32>
    %71 = vector.extract_strided_slice %64 {offsets = [0, 384], sizes = [8, 128], strides = [1, 1]} : vector<8x512xf32> to vector<8x128xf32>
    %72 = math.tanh %71 : vector<8x128xf32>
    %73 = vector.extract_strided_slice %70 {offsets = [0, 0], sizes = [8, 128], strides = [1, 1]} : vector<8x384xf32> to vector<8x128xf32>
    %74 = vector.extract_strided_slice %70 {offsets = [0, 128], sizes = [8, 128], strides = [1, 1]} : vector<8x384xf32> to vector<8x128xf32>
    %75 = vector.extract_strided_slice %70 {offsets = [0, 256], sizes = [8, 128], strides = [1, 1]} : vector<8x384xf32> to vector<8x128xf32>
    %76 = arith.mulf %74, %61 : vector<8x128xf32>
    %77 = arith.mulf %73, %72 : vector<8x128xf32>
    %78 = arith.addf %76, %77 : vector<8x128xf32>
    %79 = math.tanh %78 : vector<8x128xf32>
    %80 = arith.mulf %75, %79 : vector<8x128xf32>
    %81 = vector.extract_strided_slice %7 {offsets = [16, 0], sizes = [8, 128], strides = [1, 1]} : vector<64x128xf32> to vector<8x128xf32>
    %82 = arith.subf %80, %58 : vector<8x128xf32>
    %83 = arith.mulf %81, %82 : vector<8x128xf32>
    %84 = arith.addf %58, %83 : vector<8x128xf32>
    %85 = arith.subf %78, %61 : vector<8x128xf32>
    %86 = arith.mulf %81, %85 : vector<8x128xf32>
    %87 = arith.addf %61, %86 : vector<8x128xf32>
    %88 = vector.extract_strided_slice %5 {offsets = [24, 0], sizes = [8, 512], strides = [1, 1]} : vector<64x512xf32> to vector<8x512xf32>
    %cst_17 = arith.constant dense<0.000000e+00> : vector<8x512xf32>
    %89 = tpu.matmul %84, %6, %cst_17 {dimension_numbers = #tpu.dot_dimension_numbers<[1], [0], [0], [1], [0, 0, 1, 1], [], []>} : vector<8x128xf32>, vector<128x512xf32>, vector<8x512xf32> -> vector<8x512xf32>
    %90 = arith.addf %88, %89 : vector<8x512xf32>
    %91 = vector.extract_strided_slice %90 {offsets = [0, 0], sizes = [8, 384], strides = [1, 1]} : vector<8x512xf32> to vector<8x384xf32>
    %92 = arith.negf %91 : vector<8x384xf32>
    %93 = math.exp %92 : vector<8x384xf32>
    %cst_18 = arith.constant 1.000000e+00 : f32
    %94 = vector.broadcast %cst_18 : f32 to vector<8x384xf32>
    %95 = arith.addf %94, %93 : vector<8x384xf32>
    %96 = arith.divf %94, %95 : vector<8x384xf32>
    %97 = vector.extract_strided_slice %90 {offsets = [0, 384], sizes = [8, 128], strides = [1, 1]} : vector<8x512xf32> to vector<8x128xf32>
    %98 = math.tanh %97 : vector<8x128xf32>
    %99 = vector.extract_strided_slice %96 {offsets = [0, 0], sizes = [8, 128], strides = [1, 1]} : vector<8x384xf32> to vector<8x128xf32>
    %100 = vector.extract_strided_slice %96 {offsets = [0, 128], sizes = [8, 128], strides = [1, 1]} : vector<8x384xf32> to vector<8x128xf32>
    %101 = vector.extract_strided_slice %96 {offsets = [0, 256], sizes = [8, 128], strides = [1, 1]} : vector<8x384xf32> to vector<8x128xf32>
    %102 = arith.mulf %100, %87 : vector<8x128xf32>
    %103 = arith.mulf %99, %98 : vector<8x128xf32>
    %104 = arith.addf %102, %103 : vector<8x128xf32>
    %105 = math.tanh %104 : vector<8x128xf32>
    %106 = arith.mulf %101, %105 : vector<8x128xf32>
    %107 = vector.extract_strided_slice %7 {offsets = [24, 0], sizes = [8, 128], strides = [1, 1]} : vector<64x128xf32> to vector<8x128xf32>
    %108 = arith.subf %106, %84 : vector<8x128xf32>
    %109 = arith.mulf %107, %108 : vector<8x128xf32>
    %110 = arith.addf %84, %109 : vector<8x128xf32>
    %111 = arith.subf %104, %87 : vector<8x128xf32>
    %112 = arith.mulf %107, %111 : vector<8x128xf32>
    %113 = arith.addf %87, %112 : vector<8x128xf32>
    %114 = vector.extract_strided_slice %5 {offsets = [32, 0], sizes = [8, 512], strides = [1, 1]} : vector<64x512xf32> to vector<8x512xf32>
    %cst_19 = arith.constant dense<0.000000e+00> : vector<8x512xf32>
    %115 = tpu.matmul %110, %6, %cst_19 {dimension_numbers = #tpu.dot_dimension_numbers<[1], [0], [0], [1], [0, 0, 1, 1], [], []>} : vector<8x128xf32>, vector<128x512xf32>, vector<8x512xf32> -> vector<8x512xf32>
    %116 = arith.addf %114, %115 : vector<8x512xf32>
    %117 = vector.extract_strided_slice %116 {offsets = [0, 0], sizes = [8, 384], strides = [1, 1]} : vector<8x512xf32> to vector<8x384xf32>
    %118 = arith.negf %117 : vector<8x384xf32>
    %119 = math.exp %118 : vector<8x384xf32>
    %cst_20 = arith.constant 1.000000e+00 : f32
    %120 = vector.broadcast %cst_20 : f32 to vector<8x384xf32>
    %121 = arith.addf %120, %119 : vector<8x384xf32>
    %122 = arith.divf %120, %121 : vector<8x384xf32>
    %123 = vector.extract_strided_slice %116 {offsets = [0, 384], sizes = [8, 128], strides = [1, 1]} : vector<8x512xf32> to vector<8x128xf32>
    %124 = math.tanh %123 : vector<8x128xf32>
    %125 = vector.extract_strided_slice %122 {offsets = [0, 0], sizes = [8, 128], strides = [1, 1]} : vector<8x384xf32> to vector<8x128xf32>
    %126 = vector.extract_strided_slice %122 {offsets = [0, 128], sizes = [8, 128], strides = [1, 1]} : vector<8x384xf32> to vector<8x128xf32>
    %127 = vector.extract_strided_slice %122 {offsets = [0, 256], sizes = [8, 128], strides = [1, 1]} : vector<8x384xf32> to vector<8x128xf32>
    %128 = arith.mulf %126, %113 : vector<8x128xf32>
    %129 = arith.mulf %125, %124 : vector<8x128xf32>
    %130 = arith.addf %128, %129 : vector<8x128xf32>
    %131 = math.tanh %130 : vector<8x128xf32>
    %132 = arith.mulf %127, %131 : vector<8x128xf32>
    %133 = vector.extract_strided_slice %7 {offsets = [32, 0], sizes = [8, 128], strides = [1, 1]} : vector<64x128xf32> to vector<8x128xf32>
    %134 = arith.subf %132, %110 : vector<8x128xf32>
    %135 = arith.mulf %133, %134 : vector<8x128xf32>
    %136 = arith.addf %110, %135 : vector<8x128xf32>
    %137 = arith.subf %130, %113 : vector<8x128xf32>
    %138 = arith.mulf %133, %137 : vector<8x128xf32>
    %139 = arith.addf %113, %138 : vector<8x128xf32>
    %140 = vector.extract_strided_slice %5 {offsets = [40, 0], sizes = [8, 512], strides = [1, 1]} : vector<64x512xf32> to vector<8x512xf32>
    %cst_21 = arith.constant dense<0.000000e+00> : vector<8x512xf32>
    %141 = tpu.matmul %136, %6, %cst_21 {dimension_numbers = #tpu.dot_dimension_numbers<[1], [0], [0], [1], [0, 0, 1, 1], [], []>} : vector<8x128xf32>, vector<128x512xf32>, vector<8x512xf32> -> vector<8x512xf32>
    %142 = arith.addf %140, %141 : vector<8x512xf32>
    %143 = vector.extract_strided_slice %142 {offsets = [0, 0], sizes = [8, 384], strides = [1, 1]} : vector<8x512xf32> to vector<8x384xf32>
    %144 = arith.negf %143 : vector<8x384xf32>
    %145 = math.exp %144 : vector<8x384xf32>
    %cst_22 = arith.constant 1.000000e+00 : f32
    %146 = vector.broadcast %cst_22 : f32 to vector<8x384xf32>
    %147 = arith.addf %146, %145 : vector<8x384xf32>
    %148 = arith.divf %146, %147 : vector<8x384xf32>
    %149 = vector.extract_strided_slice %142 {offsets = [0, 384], sizes = [8, 128], strides = [1, 1]} : vector<8x512xf32> to vector<8x128xf32>
    %150 = math.tanh %149 : vector<8x128xf32>
    %151 = vector.extract_strided_slice %148 {offsets = [0, 0], sizes = [8, 128], strides = [1, 1]} : vector<8x384xf32> to vector<8x128xf32>
    %152 = vector.extract_strided_slice %148 {offsets = [0, 128], sizes = [8, 128], strides = [1, 1]} : vector<8x384xf32> to vector<8x128xf32>
    %153 = vector.extract_strided_slice %148 {offsets = [0, 256], sizes = [8, 128], strides = [1, 1]} : vector<8x384xf32> to vector<8x128xf32>
    %154 = arith.mulf %152, %139 : vector<8x128xf32>
    %155 = arith.mulf %151, %150 : vector<8x128xf32>
    %156 = arith.addf %154, %155 : vector<8x128xf32>
    %157 = math.tanh %156 : vector<8x128xf32>
    %158 = arith.mulf %153, %157 : vector<8x128xf32>
    %159 = vector.extract_strided_slice %7 {offsets = [40, 0], sizes = [8, 128], strides = [1, 1]} : vector<64x128xf32> to vector<8x128xf32>
    %160 = arith.subf %158, %136 : vector<8x128xf32>
    %161 = arith.mulf %159, %160 : vector<8x128xf32>
    %162 = arith.addf %136, %161 : vector<8x128xf32>
    %163 = arith.subf %156, %139 : vector<8x128xf32>
    %164 = arith.mulf %159, %163 : vector<8x128xf32>
    %165 = arith.addf %139, %164 : vector<8x128xf32>
    %166 = vector.extract_strided_slice %5 {offsets = [48, 0], sizes = [8, 512], strides = [1, 1]} : vector<64x512xf32> to vector<8x512xf32>
    %cst_23 = arith.constant dense<0.000000e+00> : vector<8x512xf32>
    %167 = tpu.matmul %162, %6, %cst_23 {dimension_numbers = #tpu.dot_dimension_numbers<[1], [0], [0], [1], [0, 0, 1, 1], [], []>} : vector<8x128xf32>, vector<128x512xf32>, vector<8x512xf32> -> vector<8x512xf32>
    %168 = arith.addf %166, %167 : vector<8x512xf32>
    %169 = vector.extract_strided_slice %168 {offsets = [0, 0], sizes = [8, 384], strides = [1, 1]} : vector<8x512xf32> to vector<8x384xf32>
    %170 = arith.negf %169 : vector<8x384xf32>
    %171 = math.exp %170 : vector<8x384xf32>
    %cst_24 = arith.constant 1.000000e+00 : f32
    %172 = vector.broadcast %cst_24 : f32 to vector<8x384xf32>
    %173 = arith.addf %172, %171 : vector<8x384xf32>
    %174 = arith.divf %172, %173 : vector<8x384xf32>
    %175 = vector.extract_strided_slice %168 {offsets = [0, 384], sizes = [8, 128], strides = [1, 1]} : vector<8x512xf32> to vector<8x128xf32>
    %176 = math.tanh %175 : vector<8x128xf32>
    %177 = vector.extract_strided_slice %174 {offsets = [0, 0], sizes = [8, 128], strides = [1, 1]} : vector<8x384xf32> to vector<8x128xf32>
    %178 = vector.extract_strided_slice %174 {offsets = [0, 128], sizes = [8, 128], strides = [1, 1]} : vector<8x384xf32> to vector<8x128xf32>
    %179 = vector.extract_strided_slice %174 {offsets = [0, 256], sizes = [8, 128], strides = [1, 1]} : vector<8x384xf32> to vector<8x128xf32>
    %180 = arith.mulf %178, %165 : vector<8x128xf32>
    %181 = arith.mulf %177, %176 : vector<8x128xf32>
    %182 = arith.addf %180, %181 : vector<8x128xf32>
    %183 = math.tanh %182 : vector<8x128xf32>
    %184 = arith.mulf %179, %183 : vector<8x128xf32>
    %185 = vector.extract_strided_slice %7 {offsets = [48, 0], sizes = [8, 128], strides = [1, 1]} : vector<64x128xf32> to vector<8x128xf32>
    %186 = arith.subf %184, %162 : vector<8x128xf32>
    %187 = arith.mulf %185, %186 : vector<8x128xf32>
    %188 = arith.addf %162, %187 : vector<8x128xf32>
    %189 = arith.subf %182, %165 : vector<8x128xf32>
    %190 = arith.mulf %185, %189 : vector<8x128xf32>
    %191 = arith.addf %165, %190 : vector<8x128xf32>
    %192 = vector.extract_strided_slice %5 {offsets = [56, 0], sizes = [8, 512], strides = [1, 1]} : vector<64x512xf32> to vector<8x512xf32>
    %cst_25 = arith.constant dense<0.000000e+00> : vector<8x512xf32>
    %193 = tpu.matmul %188, %6, %cst_25 {dimension_numbers = #tpu.dot_dimension_numbers<[1], [0], [0], [1], [0, 0, 1, 1], [], []>} : vector<8x128xf32>, vector<128x512xf32>, vector<8x512xf32> -> vector<8x512xf32>
    %194 = arith.addf %192, %193 : vector<8x512xf32>
    %195 = vector.extract_strided_slice %194 {offsets = [0, 0], sizes = [8, 384], strides = [1, 1]} : vector<8x512xf32> to vector<8x384xf32>
    %196 = arith.negf %195 : vector<8x384xf32>
    %197 = math.exp %196 : vector<8x384xf32>
    %cst_26 = arith.constant 1.000000e+00 : f32
    %198 = vector.broadcast %cst_26 : f32 to vector<8x384xf32>
    %199 = arith.addf %198, %197 : vector<8x384xf32>
    %200 = arith.divf %198, %199 : vector<8x384xf32>
    %201 = vector.extract_strided_slice %194 {offsets = [0, 384], sizes = [8, 128], strides = [1, 1]} : vector<8x512xf32> to vector<8x128xf32>
    %202 = math.tanh %201 : vector<8x128xf32>
    %203 = vector.extract_strided_slice %200 {offsets = [0, 0], sizes = [8, 128], strides = [1, 1]} : vector<8x384xf32> to vector<8x128xf32>
    %204 = vector.extract_strided_slice %200 {offsets = [0, 128], sizes = [8, 128], strides = [1, 1]} : vector<8x384xf32> to vector<8x128xf32>
    %205 = vector.extract_strided_slice %200 {offsets = [0, 256], sizes = [8, 128], strides = [1, 1]} : vector<8x384xf32> to vector<8x128xf32>
    %206 = arith.mulf %204, %191 : vector<8x128xf32>
    %207 = arith.mulf %203, %202 : vector<8x128xf32>
    %208 = arith.addf %206, %207 : vector<8x128xf32>
    %209 = math.tanh %208 : vector<8x128xf32>
    %210 = arith.mulf %205, %209 : vector<8x128xf32>
    %211 = vector.extract_strided_slice %7 {offsets = [56, 0], sizes = [8, 128], strides = [1, 1]} : vector<64x128xf32> to vector<8x128xf32>
    %212 = arith.subf %210, %188 : vector<8x128xf32>
    %213 = arith.mulf %211, %212 : vector<8x128xf32>
    %214 = arith.addf %188, %213 : vector<8x128xf32>
    %cst_27 = arith.constant 0.000000e+00 : f32
    %215 = vector.broadcast %cst_27 : f32 to vector<8x128xf32>
    %216 = arith.maximumf %214, %215 : vector<8x128xf32>
    %c0_28 = arith.constant 0 : index
    %c0_29 = arith.constant 0 : index
    %217 = vector.load %arg5[%c0_28, %c0_29] : memref<128x128xf32, #tpu.memory_space<vmem>>, vector<128x128xf32>
    %cst_30 = arith.constant dense<0.000000e+00> : vector<8x128xf32>
    %218 = tpu.matmul %216, %217, %cst_30 {dimension_numbers = #tpu.dot_dimension_numbers<[1], [0], [0], [1], [0, 0, 1, 1], [], []>} : vector<8x128xf32>, vector<128x128xf32>, vector<8x128xf32> -> vector<8x128xf32>
    %c0_31 = arith.constant 0 : index
    %c0_32 = arith.constant 0 : index
    %219 = vector.load %arg6[%c0_31, %c0_32] : memref<1x128xf32, #tpu.memory_space<vmem>>, vector<1x128xf32>
    %220 = vector.broadcast %219 : vector<1x128xf32> to vector<8x128xf32>
    %221 = arith.addf %218, %220 : vector<8x128xf32>
    %c0_33 = arith.constant 0 : index
    %c0_34 = arith.constant 0 : index
    %222 = vector.load %arg7[%c0_33, %c0_34] : memref<8x128xf32, #tpu.memory_space<vmem>>, vector<8x128xf32>
    tpu.vector_store %arg7[%c0_33, %c0_34], %221 {strides = array<i32>} : memref<8x128xf32, #tpu.memory_space<vmem>>, vector<8x128xf32>,
    return
  }
}

</mosaic_0001>

<bundles_post_ra>
// kernel: classify_forward.1
= control target key start
LH: loop header
LB: loop body
LE: loop exit
PB: predicated region body
PF: predicated region fallthrough
CT: control target
= control target key end

     0   :  { %vm60_vm0 = vcmask 261120   ;;  %s3437_s2 = inlined_call_operand.vmem [shape: f32[32,512], index: 2, kind: input, shape index: {}]   ;;  %s3438_s0 = inlined_call_operand.vmem [shape: f32[64,32], index: 0, kind: input, shape index: {}]   ;;  %s3439_s3 = inlined_call_operand.vmem [shape: f32[128,512], index: 3, kind: input, shape index: {}]   ;;  %s3440_s4 = inlined_call_operand.vmem [shape: f32[1,512], index: 4, kind: input, shape index: {}]   ;;  %s3441_s1 = inlined_call_operand.vmem [shape: f32[64,128], index: 1, kind: input, shape index: {}]   ;;  %s3442_s6 = inlined_call_operand.vmem [shape: f32[1,128], index: 6, kind: input, shape index: {}]   ;;  %s3443_s5 = inlined_call_operand.vmem [shape: f32[128,128], index: 5, kind: input, shape index: {}]   ;;  %s3444_s7 = inlined_call_operand.vmem [shape: f32[8,128], index: 7, kind: output, shape index: {}]  }
   0x1   :  { %v46_v0 = vld [vmem:[%s3437_s2 + $0x60] sm:$0xff]  ;;  %v1907_v5 = vld [vmem:[%s3438_s0 + $0x28] sm:$0xff]  ;;  %v1912_v6 = vld [vmem:[%s3438_s0 + $0x30] sm:$0xff] }
   0x2   :  { %v42_v1 = vld [vmem:[%s3437_s2 + $0x40] sm:$0xff]  ;;  %97 = vmatpush.msra.mxu0 %v46_v0  ;;  %1642 = vmatpush.msra.mxu1 %v46_v0  ;;  %v1917_v7 = vld [vmem:[%s3438_s0 + $0x38] sm:$0xff]  ;;  %v47_v8 = vld [vmem:[%s3437_s2 + $0x68] sm:$0xff] }
   0x3   :  { %1643 = vmatpush.msra.mxu2 %v46_v0  ;;  %1644 = vmatpush.msra.mxu3 %v46_v0  ;;  %v38_v2 = vld [vmem:[%s3437_s2 + $0x20] sm:$0xff]  ;;  %v48_v9 = vld [vmem:[%s3437_s2 + $0x70] sm:$0xff]  ;;  %v49_v10 = vld [vmem:[%s3437_s2 + $0x78] sm:$0xff] }
   0x4   :  { %98 = vmatpush.msra.mxu0 %v42_v1  ;;  %1645 = vmatpush.msra.mxu1 %v42_v1  ;;  %v34_v3 = vld [vmem:[%s3437_s2] sm:$0xff]  ;;  %v43_v12 = vld [vmem:[%s3437_s2 + $0x48] sm:$0xff]  ;;  %v44_v13 = vld [vmem:[%s3437_s2 + $0x50] sm:$0xff] }
   0x5   :  { %1646 = vmatpush.msra.mxu2 %v42_v1  ;;  %1647 = vmatpush.msra.mxu3 %v42_v1  ;;  %v26_v4 = vld [vmem:[%s3438_s0] sm:$0xff]  ;;  %v45_v14 = vld [vmem:[%s3437_s2 + $0x58] sm:$0xff]  ;;  %v39_v16 = vld [vmem:[%s3437_s2 + $0x28] sm:$0xff] }
   0x6   :  { %99 = vmatpush.msra.mxu0 %v38_v2  ;;  %1648 = vmatpush.msra.mxu1 %v38_v2  ;;  %v1934_v11 = vld [vmem:[%s3439_s3 + $0x1e0] sm:$0xff]  ;;  %v40_v17 = vld [vmem:[%s3437_s2 + $0x30] sm:$0xff]  ;;  %v41_v18 = vld [vmem:[%s3437_s2 + $0x38] sm:$0xff] }
   0x7   :  { %1649 = vmatpush.msra.mxu2 %v38_v2  ;;  %1650 = vmatpush.msra.mxu3 %v38_v2  ;;  %3539 = vst [vmem:[#allocation2_spill] sm:$0xff] %v1934_v11  ;;  %v1952_v15 = vld [vmem:[%s3439_s3 + $0x1c0] sm:$0xff]  ;;  %v35_v20 = vld [vmem:[%s3437_s2 + $0x8] sm:$0xff]  ;;  %v36_v21 = vld [vmem:[%s3437_s2 + $0x10] sm:$0xff] }
   0x8   :  { %100 = vmatpush.msra.mxu0 %v34_v3  ;;  %1651 = vmatpush.msra.mxu1 %v34_v3  ;;  %3540 = vst [vmem:[#allocation3_spill] sm:$0xff] %v1952_v15  ;;  %v1967_v19 = vld [vmem:[%s3439_s3 + $0x1a0] sm:$0xff]  ;;  %v37_v22 = vld [vmem:[%s3437_s2 + $0x18] sm:$0xff]  ;;  %v27_v23 = vld [vmem:[%s3438_s0 + $0x8] sm:$0xff] }
   0x9   :  { %1652 = vmatpush.msra.mxu2 %v34_v3  ;;  %1653 = vmatpush.msra.mxu3 %v34_v3  ;;  %v1986_v24 = vld [vmem:[%s3439_s3 + $0x1e8] sm:$0xff]  ;;  %v1992_v25 = vld [vmem:[%s3439_s3 + $0x1f0] sm:$0xff]  ;;  %v1997_v26 = vld [vmem:[%s3439_s3 + $0x180] sm:$0xff] }
   0xa   :  { %1586 = vmatmul.msk.f32.vlgmr.msra.gmra.mxu0 %vm60_vm0, %v26_v4  ;;  %1591 = vmatmul.msk.f32.vlgmr.msra.gmra.mxu1 %vm60_vm0, %v1907_v5  ;;  %v2004_v27 = vld [vmem:[%s3439_s3 + $0x1c8] sm:$0xff]  ;;  %v2009_v28 = vld [vmem:[%s3439_s3 + $0x1f8] sm:$0xff]  ;;  %v2016_v29 = vld [vmem:[%s3439_s3 + $0x160] sm:$0xff] }
   0xb   :  { %1592 = vmatmul.msk.f32.vlgmr.msra.gmra.mxu2 %vm60_vm0, %v1912_v6  ;;  %1593 = vmatmul.msk.f32.vlgmr.msra.gmra.mxu3 %vm60_vm0, %v1917_v7  ;;  %v2021_v30 = vld [vmem:[%s3439_s3 + $0x1d0] sm:$0xff]  ;;  %v2028_v31 = vld [vmem:[%s3439_s3 + $0x1a8] sm:$0xff]  ;;  %v2033_v32 = vld [vmem:[%s3439_s3 + $0x1d8] sm:$0xff] }
   0xc   :  { %138 = vmatpush.msrb.mxu1 %v47_v8  ;;  %179 = vmatpush.msrb.mxu2 %v48_v9  ;;  %v2039_v33 = vld [vmem:[%s3439_s3 + $0x140] sm:$0xff]  ;;  %v2044_v34 = vld [vmem:[%s3439_s3 + $0x1b0] sm:$0xff]  ;;  %v2055_v36 = vld [vmem:[%s3439_s3 + $0x188] sm:$0xff] }
   0xd   :  { %220 = vmatpush.msrb.mxu3 %v49_v10  ;;  %321 = vmatpush.msrb.mxu0 %v1934_v11  ;;  %v28_v35 = vld [vmem:[%s3438_s0 + $0x10] sm:$0xff]  ;;  %v2063_v37 = vld [vmem:[%s3439_s3 + $0x120] sm:$0xff]  ;;  %v2071_v38 = vld [vmem:[%s3439_s3 + $0x168] sm:$0xff] }
   0xe   :  { %139 = vmatpush.msrb.mxu1 %v43_v12  ;;  %180 = vmatpush.msrb.mxu2 %v44_v13  ;;  %v2076_v39 = vld [vmem:[%s3439_s3 + $0x190] sm:$0xff]  ;;  %v2083_v40 = vld [vmem:[%s3439_s3 + $0x100] sm:$0xff]  ;;  %v2088_v41 = vld [vmem:[%s3439_s3 + $0x1b8] sm:$0xff] }
   0xf   :  { %221 = vmatpush.msrb.mxu3 %v45_v14  ;;  %322 = vmatpush.msrb.mxu0 %v1952_v15  ;;  %v2095_v42 = vld [vmem:[%s3439_s3 + $0x148] sm:$0xff]  ;;  %v2100_v43 = vld [vmem:[%s3439_s3 + $0x170] sm:$0xff]  ;;  %v2106_v44 = vld [vmem:[%s3439_s3 + $0xe0] sm:$0xff] }
  0x10   :  { %140 = vmatpush.msrb.mxu1 %v39_v16  ;;  %181 = vmatpush.msrb.mxu2 %v40_v17  ;;  %v2112_v45 = vld [vmem:[%s3439_s3 + $0x198] sm:$0xff]  ;;  %v2119_v46 = vld [vmem:[%s3439_s3 + $0x128] sm:$0xff]  ;;  %v2124_v47 = vld [vmem:[%s3439_s3 + $0x150] sm:$0xff] }
  0x11   :  { %222 = vmatpush.msrb.mxu3 %v41_v18  ;;  %323 = vmatpush.msrb.mxu0 %v1967_v19  ;;  %v29_v48 = vld [vmem:[%s3438_s0 + $0x18] sm:$0xff]  ;;  %v2141_v50 = vld [vmem:[%s3439_s3 + $0xc0] sm:$0xff]  ;;  %v2149_v51 = vld [vmem:[%s3439_s3 + $0x108] sm:$0xff] }
  0x12   :  { %141 = vmatpush.msrb.mxu1 %v35_v20  ;;  %182 = vmatpush.msrb.mxu2 %v36_v21  ;;  %v2134_v49 = vld [vmem:[%s3439_s3 + $0x178] sm:$0xff]  ;;  %v2154_v52 = vld [vmem:[%s3439_s3 + $0x130] sm:$0xff]  ;;  %v2162_v53 = vld [vmem:[%s3439_s3 + $0xa0] sm:$0xff]  ;;  %v3445_v21 = vmov 0.0  }
  0x13   :  { %223 = vmatpush.msrb.mxu3 %v37_v22  ;;  %1587 = vmatmul.msk.f32.gmra.mxu0 %vm60_vm0, %v27_v23  ;;  %3541 = vst [vmem:[#allocation4_spill] sm:$0xff] %v2162_v53  ;;  %v2167_v54 = vld [vmem:[%s3439_s3 + $0x158] sm:$0xff]  ;;  %v2174_v55 = vld [vmem:[%s3439_s3 + $0xe8] sm:$0xff]  ;;  %v2179_v56 = vld [vmem:[%s3439_s3 + $0x110] sm:$0xff] }
  0x14   :  { %1594 = vmatmul.msk.f32.vlgmr.msrb.gmra.mxu1 %vm60_vm0, %v26_v4  ;;  %1602 = vmatmul.msk.f32.vlgmr.msrb.gmra.mxu2 %vm60_vm0, %v26_v4  ;;  %v2184_v57 = vld [vmem:[%s3439_s3 + $0x80] sm:$0xff]  ;;  %v2191_v58 = vld [vmem:[%s3439_s3 + $0x138] sm:$0xff]  ;;  %v2198_v59 = vld [vmem:[%s3439_s3 + $0xc8] sm:$0xff] }
  0x15   :  { %1610 = vmatmul.msk.f32.vlgmr.msrb.gmra.mxu3 %vm60_vm0, %v26_v4  ;;  %341 = vmatpush.msra.mxu1 %v1986_v24  ;;  %3542 = vst [vmem:[#allocation5_spill] sm:$0xff] %v2184_v57  ;;  %v2203_v60 = vld [vmem:[%s3439_s3 + $0xf0] sm:$0xff]  ;;  %v30_v61 = vld [vmem:[%s3438_s0 + $0x20] sm:$0xff]  ;;  %v2213_v62 = vld [vmem:[%s3439_s3 + $0x118] sm:$0xff] }
  0x16   :  { %361 = vmatpush.msra.mxu2 %v1992_v25  ;;  %324 = vmatpush.msrb.mxu0 %v1997_v26  ;;  %v2220_v63 = vld [vmem:[%s3439_s3 + $0x60] sm:$0xff]  ;;  %v2228_v0 = vld [vmem:[%s3439_s3 + $0xa8] sm:$0xff]  ;;  %v2233_v1 = vld [vmem:[%s3439_s3 + $0xd0] sm:$0xff] }
  0x17   :  { %342 = vmatpush.msra.mxu1 %v2004_v27  ;;  %381 = vmatpush.msra.mxu3 %v2009_v28  ;;  %3543 = vst [vmem:[#allocation6_spill] sm:$0xff] %v2220_v63  ;;  %v2241_v2 = vld [vmem:[%s3439_s3 + $0x40] sm:$0xff]  ;;  %v2246_v3 = vld [vmem:[%s3439_s3 + $0xf8] sm:$0xff]  ;;  %v2253_v4 = vld [vmem:[%s3439_s3 + $0x88] sm:$0xff] }
  0x18   :  { %325 = vmatpush.msrb.mxu0 %v2016_v29  ;;  %362 = vmatpush.msra.mxu2 %v2021_v30  ;;  %3544 = vst [vmem:[#allocation7_spill] sm:$0xff] %v2228_v0  ;;  %v2258_v8 = vld [vmem:[%s3439_s3 + $0xb0] sm:$0xff]  ;;  %v2263_v9 = vld [vmem:[%s3439_s3 + $0x20] sm:$0xff]  ;;  %v2270_v10 = vld [vmem:[%s3439_s3 + $0xd8] sm:$0xff] }
  0x19   :  { %343 = vmatpush.msra.mxu1 %v2028_v31  ;;  %382 = vmatpush.msra.mxu3 %v2033_v32  ;;  %3545 = vst [vmem:[#allocation8_spill] sm:$0xff] %v2241_v2  ;;  %v2277_v12 = vld [vmem:[%s3439_s3 + $0x68] sm:$0xff]  ;;  %v2282_v13 = vld [vmem:[%s3439_s3 + $0x90] sm:$0xff]  ;;  %v2287_v14 = vld [vmem:[%s3439_s3] sm:$0xff] }
  0x1a   :  { %326 = vmatpush.msrb.mxu0 %v2039_v33  ;;  %363 = vmatpush.msra.mxu2 %v2044_v34  ;;  %3546 = vst [vmem:[#allocation9_spill] sm:$0xff] %v2253_v4  ;;  %v2294_v16 = vld [vmem:[%s3439_s3 + $0xb8] sm:$0xff]  ;;  %v2304_v17 = vld [vmem:[%s3439_s3 + $0x48] sm:$0xff]  ;;  %v2309_v18 = vld [vmem:[%s3439_s3 + $0x70] sm:$0xff] }
  0x1b   :  { %1588 = vmatmul.msk.f32.gmra.mxu0 %vm60_vm0, %v28_v35  ;;  %344 = vmatpush.msra.mxu1 %v2055_v36  ;;  %3547 = vst [vmem:[#allocation10_spill] sm:$0xff] %v2258_v8  ;;  %v2317_v20 = vld [vmem:[%s3439_s3 + $0x98] sm:$0xff]  ;;  %v2324_v22 = vld [vmem:[%s3439_s3 + $0x28] sm:$0xff] }
  0x1c   :  { %1595 = vmatmul.msk.f32.gmra.mxu1 %vm60_vm0, %v27_v23  ;;  %1603 = vmatmul.msk.f32.gmra.mxu2 %vm60_vm0, %v27_v23  ;;  %3548 = vst [vmem:[#allocation11_spill] sm:$0xff] %v2263_v9 }
  0x1d   :  { %1611 = vmatmul.msk.f32.gmra.mxu3 %vm60_vm0, %v27_v23  ;;  %327 = vmatpush.msrb.mxu0 %v2063_v37  ;;  %3549 = vst [vmem:[#allocation12_spill] sm:$0xff] %v2270_v10  ;;  %v2329_v23 = vld [vmem:[%s3439_s3 + $0x50] sm:$0xff] }
  0x1e   :  { %345 = vmatpush.msra.mxu1 %v2071_v38  ;;  %364 = vmatpush.msra.mxu2 %v2076_v39  ;;  %3550 = vst [vmem:[#allocation13_spill] sm:$0xff] %v2277_v12 }
  0x1f   :  { %328 = vmatpush.msrb.mxu0 %v2083_v40  ;;  %383 = vmatpush.msra.mxu3 %v2088_v41  ;;  %3551 = vst [vmem:[#allocation14_spill] sm:$0xff] %v2282_v13 }
  0x20   :  { %346 = vmatpush.msra.mxu1 %v2095_v42  ;;  %365 = vmatpush.msra.mxu2 %v2100_v43  ;;  %3552 = vst [vmem:[#allocation15_spill] sm:$0xff] %v2287_v14 }
  0x21   :  { %329 = vmatpush.msrb.mxu0 %v2106_v44  ;;  %384 = vmatpush.msra.mxu3 %v2112_v45  ;;  %3553 = vst [vmem:[#allocation16_spill] sm:$0xff] %v2294_v16 }
  0x22   :  { %347 = vmatpush.msra.mxu1 %v2119_v46  ;;  %366 = vmatpush.msra.mxu2 %v2124_v47  ;;  %3554 = vst [vmem:[#allocation17_spill] sm:$0xff] %v2304_v17 }
  0x23   :  { %1589 = vmatmul.msk.f32.gmra.mxu0 %vm60_vm0, %v29_v48  ;;  %385 = vmatpush.msra.mxu3 %v2134_v49  ;;  %3555 = vst [vmem:[#allocation18_spill] sm:$0xff] %v2309_v18 }
  0x24   :  { %1596 = vmatmul.msk.f32.gmra.mxu1 %vm60_vm0, %v28_v35  ;;  %1604 = vmatmul.msk.f32.gmra.mxu2 %vm60_vm0, %v28_v35  ;;  %3556 = vst [vmem:[#allocation19_spill] sm:$0xff] %v2317_v20 }
  0x25   :  { %1612 = vmatmul.msk.f32.gmra.mxu3 %vm60_vm0, %v28_v35  ;;  %330 = vmatpush.msrb.mxu0 %v2141_v50  ;;  %3557 = vst [vmem:[#allocation20_spill] sm:$0xff] %v2324_v22  ;;  %v2336_v35 = vld [vmem:[%s3439_s3 + $0x78] sm:$0xff] }
  0x26   :  { %348 = vmatpush.msra.mxu1 %v2149_v51  ;;  %367 = vmatpush.msra.mxu2 %v2154_v52  ;;  %3558 = vst [vmem:[#allocation21_spill] sm:$0xff] %v2329_v23 }
  0x27   :  { %331 = vmatpush.msrb.mxu0 %v2162_v53  ;;  %386 = vmatpush.msra.mxu3 %v2167_v54  ;;  %3559 = vst [vmem:[#allocation22_spill] sm:$0xff] %v2336_v35 }
  0x28   :  { %349 = vmatpush.msra.mxu1 %v2174_v55  ;;  %368 = vmatpush.msra.mxu2 %v2179_v56 }
  0x29   :  { %332 = vmatpush.msrb.mxu0 %v2184_v57  ;;  %387 = vmatpush.msra.mxu3 %v2191_v58 }
  0x2a   :  { %350 = vmatpush.msra.mxu1 %v2198_v59  ;;  %369 = vmatpush.msra.mxu2 %v2203_v60 }
  0x2b   :  { %1590 = vmatmul.msk.f32.gmra.mxu0 %vm60_vm0, %v30_v61  ;;  %388 = vmatpush.msra.mxu3 %v2213_v62 }
  0x2c   :  { %1597 = vmatmul.msk.f32.gmra.mxu1 %vm60_vm0, %v29_v48  ;;  %1605 = vmatmul.msk.f32.gmra.mxu2 %vm60_vm0, %v29_v48 }
  0x2d   :  { %1613 = vmatmul.msk.f32.gmra.mxu3 %vm60_vm0, %v29_v48  ;;  %333 = vmatpush.msrb.mxu0 %v2220_v63  ;;  %v2342_v48 = vld [vmem:[%s3439_s3 + $0x8] sm:$0xff] }
  0x2e   :  { %351 = vmatpush.msra.mxu1 %v2228_v0  ;;  %370 = vmatpush.msra.mxu2 %v2233_v1  ;;  %3560 = vst [vmem:[#allocation23_spill] sm:$0xff] %v2342_v48 }
  0x2f   :  { %334 = vmatpush.msrb.mxu0 %v2241_v2  ;;  %389 = vmatpush.msra.mxu3 %v2246_v3 }
  0x30   :  { %352 = vmatpush.msra.mxu1 %v2253_v4  ;;  %371 = vmatpush.msra.mxu2 %v2258_v8 }
  0x31   :  { %335 = vmatpush.msrb.mxu0 %v2263_v9  ;;  %390 = vmatpush.msra.mxu3 %v2270_v10 }
  0x32   :  { %353 = vmatpush.msra.mxu1 %v2277_v12  ;;  %372 = vmatpush.msra.mxu2 %v2282_v13 }
  0x33   :  { %336 = vmatpush.msrb.mxu0 %v2287_v14  ;;  %391 = vmatpush.msra.mxu3 %v2294_v16  ;;  %v2370_v14 = vld [vmem:[%s3439_s3 + $0x38] sm:$0xff] }
  0x34   :  { %1598 = vmatmul.msk.f32.gmra.mxu1 %vm60_vm0, %v30_v61  ;;  %1606 = vmatmul.msk.f32.gmra.mxu2 %vm60_vm0, %v30_v61  ;;  %3564 = vst [vmem:[#allocation27_spill] sm:$0xff] %v2370_v14 }
  0x35   :  { %1614 = vmatmul.msk.f32.gmra.mxu3 %vm60_vm0, %v30_v61  ;;  %337 = vmatmul.f32.vlgmr.msrb.gmra.mxu0 %v3445_v21  ;;  %v2347_v61 = vld [vmem:[%s3439_s3 + $0x30] sm:$0xff]  ;;  %v2355_v21 = vld [vmem:[%s3439_s3 + $0x58] sm:$0xff] }
  0x36   :  { %354 = vmatpush.msra.mxu1 %v2304_v17  ;;  %373 = vmatpush.msra.mxu2 %v2309_v18  ;;  %3561 = vst [vmem:[#allocation24_spill] sm:$0xff] %v2347_v61 }
  0x37   :  { %392 = vmatpush.msra.mxu3 %v2317_v20  ;;  %472 = vmatpush.msra.mxu0 %v1934_v11  ;;  %3562 = vst [vmem:[#allocation25_spill] sm:$0xff] %v2355_v21  ;;  %v2364_v11 = vld [vmem:[%s3439_s3 + $0x10] sm:$0xff] }
  0x38   :  { %355 = vmatpush.msra.mxu1 %v2324_v22  ;;  %374 = vmatpush.msra.mxu2 %v2329_v23  ;;  %3563 = vst [vmem:[#allocation26_spill] sm:$0xff] %v2364_v11 }
  0x39   :  { %393 = vmatpush.msra.mxu3 %v2336_v35  ;;  %473 = vmatpush.msra.mxu0 %v1952_v15  ;;  %v2383_v15 = vld [vmem:[%s3439_s3 + $0x18] sm:$0xff] }
  0x3a   :  { %356 = vmatpush.msra.mxu1 %v2342_v48  ;;  %375 = vmatpush.msra.mxu2 %v2347_v61  ;;  %3565 = vst [vmem:[#allocation28_spill] sm:$0xff] %v2383_v15 }
  0x3b   :  { %394 = vmatpush.msra.mxu3 %v2355_v21  ;;  %474 = vmatpush.msra.mxu0 %v1967_v19 }
  0x3c   :  { %492 = vmatpush.msrb.mxu1 %v1986_v24  ;;  %1607 = vmatmul.msk.f32.gmra.mxu2 %vm60_vm0, %v1907_v5 }
  0x3d   :  { %1599 = vmatmul.msk.f32.gmra.mxu1 %vm60_vm0, %v1907_v5  ;;  %1615 = vmatmul.msk.f32.gmra.mxu3 %vm60_vm0, %v1907_v5  ;;  %v3566_v5 = vmov 0.0  }
  0x3e   :  { %376 = vmatpush.msra.mxu2 %v2364_v11  ;;  %395 = vmatpush.msra.mxu3 %v2370_v14 }
  0x3f   :  { %493 = vmatpush.msrb.mxu1 %v2004_v27  ;;  %475 = vmatpush.msra.mxu0 %v1997_v26 }
  0x40   :  { %512 = vmatpush.msrb.mxu2 %v1992_v25  ;;  %396 = vmatpush.msra.mxu3 %v2383_v15 }
  0x41   :  { %494 = vmatpush.msrb.mxu1 %v2028_v31  ;;  %476 = vmatpush.msra.mxu0 %v2016_v29 }
  0x42   :  { %513 = vmatpush.msrb.mxu2 %v2021_v30  ;;  %532 = vmatpush.msrb.mxu3 %v2009_v28 }
  0x43   :  { %495 = vmatpush.msrb.mxu1 %v2055_v36  ;;  %477 = vmatpush.msra.mxu0 %v2039_v33 }
  0x44   :  { %514 = vmatpush.msrb.mxu2 %v2044_v34  ;;  %533 = vmatpush.msrb.mxu3 %v2033_v32 }
  0x45   :  { %1600 = vmatmul.msk.f32.gmra.mxu1 %vm60_vm0, %v1912_v6  ;;  %1608 = vmatmul.msk.f32.gmra.mxu2 %vm60_vm0, %v1912_v6 }
  0x46   :  { %1616 = vmatmul.msk.f32.gmra.mxu3 %vm60_vm0, %v1912_v6  ;;  %515 = vmatpush.msrb.mxu2 %v2076_v39  ;;  %v3567_v6 = vld [vmem:[#allocation15_spill] sm:$0xff] }
  0x47   :  { %534 = vmatpush.msrb.mxu3 %v2088_v41  ;;  %496 = vmatpush.msrb.mxu1 %v2071_v38 }
  0x48   :  { %516 = vmatpush.msrb.mxu2 %v2100_v43  ;;  %478 = vmatpush.msra.mxu0 %v2063_v37 }
  0x49   :  { %535 = vmatpush.msrb.mxu3 %v2112_v45  ;;  %497 = vmatpush.msrb.mxu1 %v2095_v42 }
  0x4a   :  { %517 = vmatpush.msrb.mxu2 %v2124_v47  ;;  %479 = vmatpush.msra.mxu0 %v2083_v40 }
  0x4b   :  { %536 = vmatpush.msrb.mxu3 %v2134_v49  ;;  %498 = vmatpush.msrb.mxu1 %v2119_v46 }
  0x4c   :  { %518 = vmatpush.msrb.mxu2 %v2154_v52  ;;  %480 = vmatpush.msra.mxu0 %v2106_v44 }
  0x4d   :  { %1601 = vmatmul.msk.f32.gmra.mxu1 %vm60_vm0, %v1917_v7  ;;  %1609 = vmatmul.msk.f32.gmra.mxu2 %vm60_vm0, %v1917_v7 }
  0x4e   :  { %1617 = vmatmul.msk.f32.gmra.mxu3 %vm60_vm0, %v1917_v7  ;;  %499 = vmatpush.msrb.mxu1 %v2149_v51  ;;  %v3568_v7 = vld [vmem:[#allocation2_spill] sm:$0xff] }
  0x4f   :  { %537 = vmatpush.msrb.mxu3 %v2167_v54  ;;  %519 = vmatpush.msrb.mxu2 %v2179_v56 }
  0x50   :  { %500 = vmatpush.msrb.mxu1 %v2174_v55  ;;  %481 = vmatpush.msra.mxu0 %v2141_v50 }
  0x51   :  { %538 = vmatpush.msrb.mxu3 %v2191_v58  ;;  %520 = vmatpush.msrb.mxu2 %v2203_v60 }
  0x52   :  { %501 = vmatpush.msrb.mxu1 %v2198_v59  ;;  %482 = vmatpush.msra.mxu0 %v2162_v53 }
  0x53   :  { %539 = vmatpush.msrb.mxu3 %v2213_v62  ;;  %521 = vmatpush.msrb.mxu2 %v2233_v1 }
  0x54   :  { %502 = vmatpush.msrb.mxu1 %v2228_v0  ;;  %483 = vmatpush.msra.mxu0 %v2184_v57 }
  0x55   :  { %357 = vmatmul.f32.vlgmr.msra.gmra.mxu1 %v3566_v5  ;;  %377 = vmatmul.f32.vlgmr.msra.gmra.mxu2 %v3566_v5 }
  0x56   :  { %397 = vmatmul.f32.vlgmr.msra.gmra.mxu3 %v3566_v5  ;;  %522 = vmatpush.msrb.mxu2 %v2258_v8  ;;  %v3569_v5 = vld [vmem:[#allocation3_spill] sm:$0xff] }
  0x57   :  { %540 = vmatpush.msrb.mxu3 %v2246_v3  ;;  %503 = vmatpush.msrb.mxu1 %v2253_v4 }
  0x58   :  { %523 = vmatpush.msrb.mxu2 %v2282_v13  ;;  %484 = vmatpush.msra.mxu0 %v2220_v63 }
  0x59   :  { %541 = vmatpush.msrb.mxu3 %v2270_v10  ;;  %504 = vmatpush.msrb.mxu1 %v2277_v12 }
  0x5a   :  { %524 = vmatpush.msrb.mxu2 %v2309_v18  ;;  %485 = vmatpush.msra.mxu0 %v2241_v2 }
  0x5b   :  { %542 = vmatpush.msrb.mxu3 %v2294_v16  ;;  %505 = vmatpush.msrb.mxu1 %v2304_v17 }
  0x5c   :  { %525 = vmatpush.msrb.mxu2 %v2329_v23  ;;  %486 = vmatpush.msra.mxu0 %v2263_v9 }
  0x5d   :  { %543 = vmatpush.msrb.mxu3 %v2317_v20  ;;  %506 = vmatpush.msrb.mxu1 %v2324_v22 }
  0x5e   :  { %526 = vmatpush.msrb.mxu2 %v2347_v61  ;;  %487 = vmatpush.msra.mxu0 %v3567_v6 }
  0x5f   :  { %544 = vmatpush.msrb.mxu3 %v2336_v35  ;;  %507 = vmatpush.msrb.mxu1 %v2342_v48 }
  0x60   :  { %527 = vmatpush.msrb.mxu2 %v2364_v11  ;;  %625 = vmatpush.msrb.mxu0 %v3568_v7 }
  0x61   :  { %545 = vmatpush.msrb.mxu3 %v2355_v21  ;;  %645 = vmatpush.msra.mxu1 %v1986_v24 }
  0x62   :  { %665 = vmatpush.msra.mxu2 %v1992_v25  ;;  %626 = vmatpush.msrb.mxu0 %v3569_v5 }
  0x63   :  { %546 = vmatpush.msrb.mxu3 %v2370_v14  ;;  %646 = vmatpush.msra.mxu1 %v2004_v27 }
  0x64   :  { %666 = vmatpush.msra.mxu2 %v2021_v30  ;;  %627 = vmatpush.msrb.mxu0 %v1967_v19 }
  0x65   :  { %547 = vmatpush.msrb.mxu3 %v2383_v15  ;;  %647 = vmatpush.msra.mxu1 %v2028_v31 }
  0x66   :  { %667 = vmatpush.msra.mxu2 %v2044_v34  ;;  %628 = vmatpush.msrb.mxu0 %v1997_v26 }
  0x67   :  { %685 = vmatpush.msra.mxu3 %v2009_v28  ;;  %648 = vmatpush.msra.mxu1 %v2055_v36 }
  0x68   :  { %668 = vmatpush.msra.mxu2 %v2076_v39  ;;  %629 = vmatpush.msrb.mxu0 %v2016_v29 }
  0x69   :  { %686 = vmatpush.msra.mxu3 %v2033_v32  ;;  %649 = vmatpush.msra.mxu1 %v2071_v38 }
  0x6a   :  { %669 = vmatpush.msra.mxu2 %v2100_v43  ;;  %630 = vmatpush.msrb.mxu0 %v2039_v33 }
  0x6b   :  { %687 = vmatpush.msra.mxu3 %v2088_v41  ;;  %650 = vmatpush.msra.mxu1 %v2095_v42 }
  0x6c   :  { %670 = vmatpush.msra.mxu2 %v2124_v47  ;;  %631 = vmatpush.msrb.mxu0 %v2063_v37 }
  0x6d   :  { %688 = vmatpush.msra.mxu3 %v2112_v45  ;;  %651 = vmatpush.msra.mxu1 %v2119_v46 }
  0x6e   :  { %671 = vmatpush.msra.mxu2 %v2154_v52  ;;  %632 = vmatpush.msrb.mxu0 %v2083_v40 }
  0x6f   :  { %689 = vmatpush.msra.mxu3 %v2134_v49  ;;  %652 = vmatpush.msra.mxu1 %v2149_v51 }
  0x70   :  { %672 = vmatpush.msra.mxu2 %v2179_v56  ;;  %633 = vmatpush.msrb.mxu0 %v2106_v44 }
  0x71   :  { %690 = vmatpush.msra.mxu3 %v2167_v54  ;;  %653 = vmatpush.msra.mxu1 %v2174_v55 }
  0x72   :  { %673 = vmatpush.msra.mxu2 %v2203_v60  ;;  %634 = vmatpush.msrb.mxu0 %v2141_v50 }
  0x73   :  { %691 = vmatpush.msra.mxu3 %v2191_v58  ;;  %654 = vmatpush.msra.mxu1 %v2198_v59 }
  0x74   :  { %674 = vmatpush.msra.mxu2 %v2233_v1  ;;  %635 = vmatpush.msrb.mxu0 %v2162_v53 }
  0x75   :  { %692 = vmatpush.msra.mxu3 %v2213_v62  ;;  %655 = vmatpush.msra.mxu1 %v2228_v0 }
  0x76   :  { %675 = vmatpush.msra.mxu2 %v2258_v8  ;;  %636 = vmatpush.msrb.mxu0 %v2184_v57 }
  0x77   :  { %693 = vmatpush.msra.mxu3 %v2246_v3  ;;  %656 = vmatpush.msra.mxu1 %v2253_v4 }
  0x78   :  { %676 = vmatpush.msra.mxu2 %v2282_v13  ;;  %637 = vmatpush.msrb.mxu0 %v2220_v63 }
  0x79   :  { %694 = vmatpush.msra.mxu3 %v2270_v10  ;;  %657 = vmatpush.msra.mxu1 %v2277_v12 }
  0x7a   :  { %677 = vmatpush.msra.mxu2 %v2309_v18  ;;  %638 = vmatpush.msrb.mxu0 %v2241_v2 }
  0x7b   :  { %695 = vmatpush.msra.mxu3 %v2294_v16  ;;  %658 = vmatpush.msra.mxu1 %v2304_v17 }
  0x7c   :  { %678 = vmatpush.msra.mxu2 %v2329_v23  ;;  %639 = vmatpush.msrb.mxu0 %v2263_v9  ;;  %v50_v23 = vld [vmem:[%s3440_s4] sm:$0xf] }
  0x7d   :  { %696 = vmatpush.msra.mxu3 %v2317_v20  ;;  %659 = vmatpush.msra.mxu1 %v2324_v22  ;;  %v52_v9 = vperm.slane %v50_v23, 0  ;;  %v54_v13 = vperm.slane %v50_v23, 2 }
  0x7e   :  { %679 = vmatpush.msra.mxu2 %v2347_v61  ;;  %640 = vmatpush.msrb.mxu0 %v3567_v6 }
  0x7f   :  { %697 = vmatpush.msra.mxu3 %v2336_v35  ;;  %660 = vmatpush.msra.mxu1 %v2342_v48 }
  0x80   :  { %680 = vmatpush.msra.mxu2 %v2364_v11 }
  0x81   :  { %698 = vmatpush.msra.mxu3 %v2355_v21 }
  0x83   :  { %699 = vmatpush.msra.mxu3 %v2370_v14  ;;  %v53_v14 = vperm.slane %v50_v23, 1 }
  0x85   :  { %700 = vmatpush.msra.mxu3 %v2383_v15 }
  0x87   :  { %v102_v22 = vpop.f32.mrf.mxu0  ;;  %v117_v17 = vpop.f32.mrf.mxu1 }
  0x88   :  { %v2530_v61 = vadd.f32 %v117_v17, %v52_v9 }
  0x8a   :  { %3570 = vst [vmem:[#allocation2_spill] sm:$0xff] %v2530_v61 }
  0x8e   :  { %v120_v21 = vpop.f32.mrf.mxu2  ;;  %v123_v2 = vpop.f32.mrf.mxu3 }
  0x8f   :  { %v2532_v6 = vadd.f32 %v120_v21, %v52_v9  ;;  %v2534_v48 = vadd.f32 %v123_v2, %v52_v9  ;;  %v2546_v21 = vperm.slane %v50_v23, 3 }
  0x90   :  { %v105_v11 = vpop.f32.mrf.mxu0 }
  0x91   :  { %3571 = vst [vmem:[#allocation3_spill] sm:$0xff] %v2532_v6  ;;  %v2536_v35 = vadd.f32 %v105_v11, %v52_v9  ;;  %v143_v18 = vpop.f32.mrf.mxu1 }
  0x92   :  { %3572 = vst [vmem:[#allocation29_spill] sm:$0xff] %v2534_v48 }
  0x93   :  { %3573 = vst [vmem:[#allocation30_spill] sm:$0xff] %v2536_v35 }
  0x97   :  { %v2538_v12 = vpop.f32.mrf.mxu2 }
  0x98   :  { %v2540_v63 = vpop.f32.mrf.mxu3  ;;  %v108_v15 = vpop.f32.mrf.mxu0 }
  0x99   :  { %v2542_v20 = vadd.f32 %v108_v15, %v52_v9  ;;  %v146_v17 = vpop.f32.mrf.mxu1 }
  0x9a   :  { %v2544_v61 = vadd.f32 %v146_v17, %v53_v14 }
  0x9b   :  { %3574 = vst [vmem:[#allocation31_spill] sm:$0xff] %v2542_v20 }
  0x9c   :  { %3575 = vst [vmem:[#allocation32_spill] sm:$0xff] %v2544_v61 }
  0x9f   :  { %v187_v2 = vpop.f32.mrf.mxu2 }
  0xa0   :  { %v2548_v48 = vadd.f32 %v187_v2, %v54_v13  ;;  %v228_v11 = vpop.f32.mrf.mxu3  ;;  %v111_v6 = vpop.f32.mrf.mxu0 }
  0xa1   :  { %v2551_v35 = vadd.f32 %v228_v11, %v2546_v21  ;;  %v2553_v4 = vadd.f32 %v111_v6, %v52_v9  ;;  %v149_v57 = vpop.f32.mrf.mxu1 }
  0xa2   :  { %3576 = vst [vmem:[#allocation33_spill] sm:$0xff] %v2548_v48  ;;  %v2555_v16 = vadd.f32 %v149_v57, %v53_v14 }
  0xa3   :  { %3577 = vst [vmem:[#allocation34_spill] sm:$0xff] %v2551_v35 }
  0xa4   :  { %3578 = vst [vmem:[#allocation35_spill] sm:$0xff] %v2553_v4 }
  0xa5   :  { %3579 = vst [vmem:[#allocation36_spill] sm:$0xff] %v2555_v16 }
  0xa7   :  { %v190_v15 = vpop.f32.mrf.mxu2 }
  0xa8   :  { %v2557_v20 = vadd.f32 %v190_v15, %v54_v13  ;;  %v231_v17 = vpop.f32.mrf.mxu3  ;;  %v114_v61 = vpop.f32.mrf.mxu0 }
  0xa9   :  { %v2560_v23 = vadd.f32 %v231_v17, %v2546_v21  ;;  %v2562_v2 = vadd.f32 %v114_v61, %v52_v9  ;;  %v152_v48 = vpop.f32.mrf.mxu1 }
  0xaa   :  { %3580 = vst [vmem:[#allocation37_spill] sm:$0xff] %v2557_v20  ;;  %v2564_v8 = vadd.f32 %v152_v48, %v53_v14 }
  0xab   :  { %3581 = vst [vmem:[#allocation38_spill] sm:$0xff] %v2560_v23 }
  0xac   :  { %3582 = vst [vmem:[#allocation39_spill] sm:$0xff] %v2562_v2 }
  0xad   :  { %3583 = vst [vmem:[#allocation40_spill] sm:$0xff] %v2564_v8 }
  0xaf   :  { %v193_v11 = vpop.f32.mrf.mxu2 }
  0xb0   :  { %v2566_v35 = vadd.f32 %v193_v11, %v54_v13  ;;  %v234_v6 = vpop.f32.mrf.mxu3  ;;  %v103_v11 = vadd.f32 %v102_v22, %v52_v9 }
  0xb1   :  { %v2569_v57 = vadd.f32 %v234_v6, %v2546_v21  ;;  %v155_v4 = vpop.f32.mrf.mxu1 }
  0xb2   :  { %3584 = vst [vmem:[#allocation41_spill] sm:$0xff] %v2566_v35  ;;  %v2571_v15 = vadd.f32 %v155_v4, %v53_v14  ;;  %v338_v8 = vpop.f32.mrf.mxu0 }
  0xb3   :  { %3585 = vst [vmem:[#allocation42_spill] sm:$0xff] %v2569_v57  ;;  %v401_v35 = vadd.f32 %v338_v8, %v103_v11 }
  0xb4   :  { %3586 = vst [vmem:[#allocation43_spill] sm:$0xff] %v2571_v15 }
  0xb7   :  { %v196_v20 = vpop.f32.mrf.mxu2 }
  0xb8   :  { %v2573_v16 = vadd.f32 %v196_v20, %v54_v13  ;;  %v237_v17 = vpop.f32.mrf.mxu3  ;;  %v1618_v20 = vmul.f32 -1.442695, %v401_v35 }
  0xb9   :  { %v2576_v61 = vadd.f32 %v237_v17, %v2546_v21 }
  0xba   :  { %3587 = vst [vmem:[#allocation44_spill] sm:$0xff] %v2573_v16  ;;  %v158_v2 = vpop.f32.mrf.mxu1  ;;  %1656 = vpow2.f32 %v1618_v20 }
  0xbb   :  { %3588 = vst [vmem:[#allocation45_spill] sm:$0xff] %v2576_v61  ;;  %v2578_v48 = vadd.f32 %v158_v2, %v53_v14 }
  0xbd   :  { %3589 = vst [vmem:[#allocation46_spill] sm:$0xff] %v2578_v48 }
  0xbf   :  { %v199_v23 = vpop.f32.mrf.mxu2 }
  0xc0   :  { %v2580_v0 = vadd.f32 %v199_v23, %v54_v13  ;;  %v240_v6 = vpop.f32.mrf.mxu3  ;;  %v1657_v22 = vpop.eup %1656 }
  0xc1   :  { %v2583_v4 = vadd.f32 %v240_v6, %v2546_v21  ;;  %v414_v23 = vadd.f32 1.0, %v1657_v22  ;;  %v144_v6 = vadd.f32 %v143_v18, %v53_v14 }
  0xc2   :  { %3590 = vst [vmem:[#allocation47_spill] sm:$0xff] %v2580_v0  ;;  %v161_v15 = vpop.f32.mrf.mxu1 }
  0xc3   :  { %3591 = vst [vmem:[#allocation48_spill] sm:$0xff] %v2583_v4  ;;  %v2585_v16 = vadd.f32 %v161_v15, %v53_v14  ;;  %1658 = vrcp.f32 %v414_v23  ;;  %vm422_vm2 = vweird.f32 %v414_v23 }
  0xc5   :  { %3592 = vst [vmem:[#allocation49_spill] sm:$0xff] %v2585_v16 }
  0xc8   :  { %v202_v17 = vpop.f32.mrf.mxu2 }
  0xc9   :  { %v2587_v61 = vadd.f32 %v202_v17, %v54_v13  ;;  %v243_v2 = vpop.f32.mrf.mxu3 }
  0xca   :  { %v2590_v48 = vadd.f32 %v243_v2, %v2546_v21  ;;  %v164_v8 = vpop.f32.mrf.mxu1  ;;  %v185_v2 = vadd.f32 %v2538_v12, %v54_v13 }
  0xcb   :  { %3593 = vst [vmem:[#allocation50_spill] sm:$0xff] %v2587_v61  ;;  %v2592_v9 = vadd.f32 %v164_v8, %v53_v14 }
  0xcc   :  { %3594 = vst [vmem:[#allocation51_spill] sm:$0xff] %v2590_v48 }
  0xcd   :  { %3595 = vst [vmem:[#allocation52_spill] sm:$0xff] %v2592_v9  ;;  %v1659_v9 = vpop.eup %1658 }
  0xce   :  { %v418_v0 = vmul.f32 %v1659_v9, %v414_v23  ;;  %vm423_vm1 = vweird.f32 %v1659_v9 }
  0xcf   :  { %vm424_vm4 = vmor %vm422_vm2, %vm423_vm1 }
  0xd0   :  { %v205_v11 = vpop.f32.mrf.mxu2  ;;  %v419_v18 = vsub.f32 1.0, %v418_v0  ;;  %v426_v0 = vand.u32 2147483647, %v414_v23 }
  0xd1   :  { %v2594_v4 = vadd.f32 %v205_v11, %v54_v13  ;;  %v246_v35 = vpop.f32.mrf.mxu3 }
  0xd2   :  { %v2597_v15 = vadd.f32 %v246_v35, %v2546_v21  ;;  %v358_v20 = vpop.f32.mrf.mxu1  ;;  %v226_v35 = vadd.f32 %v2540_v63, %v2546_v21  ;;  %vm427_vm7 = vcmp.eq.f32.partialorder %v426_v0, 8.507059e+37 }
  0xd3   :  { %3596 = vst [vmem:[#allocation53_spill] sm:$0xff] %v2594_v4  ;;  %v402_v17 = vadd.f32 %v358_v20, %v144_v6 }
  0xd4   :  { %3597 = vst [vmem:[#allocation54_spill] sm:$0xff] %v2597_v15  ;;  %v420_v15 = vmul.f32 %v1659_v9, %v419_v18 }
  0xd5   :  { %v1619_v61 = vmul.f32 -1.442695, %v402_v17 }
  0xd7   :  { %1660 = vpow2.f32 %v1619_v61 }
  0xd8   :  { %v378_v48 = vpop.f32.mrf.mxu2 }
  0xd9   :  { %v403_v8 = vadd.f32 %v378_v48, %v185_v2  ;;  %v398_v11 = vpop.f32.mrf.mxu3  ;;  %v421_v48 = vadd.f32 %v1659_v9, %v420_v15 }
  0xda   :  { %v404_v17 = vadd.f32 %v398_v11, %v226_v35 }
  0xdb   :  { %v1620_v16 = vmul.f32 -1.442695, %v403_v8  ;;  %v425_v21 = vsel %vm424_vm4, %v1659_v9, %v421_v48 }
  0xdd   :  { %v1661_v22 = vpop.eup %1660  ;;  %1662 = vpow2.f32 %v1620_v16  ;;  %v428_v16 = vand.u32 2147483648, %v414_v23 }
  0xde   :  { %v415_v14 = vadd.f32 1.0, %v1661_v22 }
  0xe0   :  { %1664 = vrcp.f32 %v415_v14  ;;  %v443_v2 = vand.u32 2147483648, %v415_v14  ;;  %v441_v22 = vand.u32 2147483647, %v415_v14  ;;  %vm437_vm5 = vweird.f32 %v415_v14 }
  0xe2   :  { %v444_v35 = vor.u32 1.1754944e-38, %v443_v2  ;;  %vm442_vm8 = vcmp.eq.f32.partialorder %v441_v22, 8.507059e+37 }
  0xe3   :  { %v1663_v6 = vpop.eup %1662 }
  0xe4   :  { %v416_v20 = vadd.f32 1.0, %v1663_v6  ;;  %v429_v6 = vor.u32 1.1754944e-38, %v428_v16 }
  0xe6   :  { %v1665_v12 = vpop.eup %1664  ;;  %1666 = vrcp.f32 %v416_v20  ;;  %v458_v48 = vand.u32 2147483648, %v416_v20  ;;  %vm452_vm10 = vweird.f32 %v416_v20  ;;  %v456_v16 = vand.u32 2147483647, %v416_v20 }
  0xe7   :  { %v433_v13 = vmul.f32 %v1665_v12, %v415_v14  ;;  %1668 = vtanh.f32 %v404_v17  ;;  %vm438_vm3 = vweird.f32 %v1665_v12  ;;  %v313_v14 = vld [vmem:[%s3441_s1] sm:$0xff] }
  0xe8   :  { %vm439_vm6 = vmor %vm437_vm5, %vm438_vm3  ;;  %vm457_vm12 = vcmp.eq.f32.partialorder %v456_v16, 8.507059e+37 }
  0xe9   :  { %v434_v61 = vsub.f32 1.0, %v433_v13  ;;  %v430_v13 = vsel %vm427_vm7, %v429_v6, %v425_v21 }
  0xeb   :  { %v435_v8 = vmul.f32 %v1665_v12, %v434_v61 }
  0xec   :  { %v1667_v4 = vpop.eup %1666 }
  0xed   :  { %v448_v63 = vmul.f32 %v1667_v4, %v416_v20  ;;  %v436_v18 = vadd.f32 %v1665_v12, %v435_v8  ;;  %v1669_v11 = vpop.eup %1668  ;;  %vm453_vm9 = vweird.f32 %v1667_v4  ;;  %v459_v8 = vor.u32 1.1754944e-38, %v458_v48 }
  0xee   :  { %v464_v53 = vmul.f32 %v1669_v11, %v430_v13  ;;  %vm454_vm11 = vmor %vm452_vm10, %vm453_vm9  ;;  %v3626_v11 = vld [vmem:[#allocation34_spill] sm:$0xff] }
  0xef   :  { %v449_v17 = vsub.f32 1.0, %v448_v63  ;;  %v440_v15 = vsel %vm439_vm6, %v1665_v12, %v436_v18 }
  0xf0   :  { %v445_v57 = vsel %vm442_vm8, %v444_v35, %v440_v15 }
  0xf1   :  { %v450_v61 = vmul.f32 %v1667_v4, %v449_v17  ;;  %v463_v23 = vmul.f32 0.0, %v445_v57 }
  0xf3   :  { %v465_v10 = vadd.f32 %v464_v53, %v463_v23  ;;  %v451_v9 = vadd.f32 %v1667_v4, %v450_v61 }
  0xf5   :  { %1670 = vtanh.f32 %v465_v10  ;;  %v2605_v2 = vmul.f32 %v465_v10, %v313_v14  ;;  %v455_v12 = vsel %vm454_vm11, %v1667_v4, %v451_v9 }
  0xf6   :  { %v460_v57 = vsel %vm457_vm12, %v459_v8, %v455_v12 }
  0xfb   :  { %v1671_v0 = vpop.eup %1670 }
  0xfc   :  { %v467_v22 = vmul.f32 %v1671_v0, %v460_v57 }
  0xfe   :  { %v2607_v63 = vmul.f32 %v467_v22, %v313_v14 }
 0x100   :  { %488 = vmatmul.f32.vlgmr.msra.gmra.mxu0 %v2607_v63  ;;  %508 = vmatmul.f32.vlgmr.msrb.gmra.mxu1 %v2607_v63 }
 0x101   :  { %528 = vmatmul.f32.vlgmr.msrb.gmra.mxu2 %v2607_v63  ;;  %548 = vmatmul.f32.vlgmr.msrb.gmra.mxu3 %v2607_v63 }
 0x102   :  { %778 = vmatpush.msra.mxu0 %v3568_v7  ;;  %798 = vmatpush.msrb.mxu1 %v1986_v24  ;;  %v3599_v24 = vld [vmem:[#allocation4_spill] sm:$0xff] }
 0x103   :  { %818 = vmatpush.msrb.mxu2 %v1992_v25  ;;  %838 = vmatpush.msrb.mxu3 %v2009_v28  ;;  %v3600_v25 = vld [vmem:[#allocation7_spill] sm:$0xff]  ;;  %v3603_v28 = vld [vmem:[#allocation5_spill] sm:$0xff] }
 0x104   :  { %779 = vmatpush.msra.mxu0 %v3569_v5  ;;  %799 = vmatpush.msrb.mxu1 %v2004_v27  ;;  %v3602_v27 = vld [vmem:[#allocation16_spill] sm:$0xff] }
 0x105   :  { %819 = vmatpush.msrb.mxu2 %v2021_v30  ;;  %839 = vmatpush.msrb.mxu3 %v2033_v32  ;;  %v3605_v30 = vld [vmem:[#allocation14_spill] sm:$0xff] }
 0x106   :  { %780 = vmatpush.msra.mxu0 %v1967_v19  ;;  %800 = vmatpush.msrb.mxu1 %v2028_v31  ;;  %v3598_v19 = vld [vmem:[#allocation12_spill] sm:$0xff]  ;;  %v3606_v31 = vld [vmem:[#allocation19_spill] sm:$0xff]  ;;  %v3607_v32 = vld [vmem:[#allocation6_spill] sm:$0xff] }
 0x107   :  { %820 = vmatpush.msrb.mxu2 %v2044_v34  ;;  %840 = vmatpush.msrb.mxu3 %v2088_v41  ;;  %v3609_v34 = vld [vmem:[#allocation18_spill] sm:$0xff]  ;;  %v3615_v41 = vld [vmem:[#allocation11_spill] sm:$0xff] }
 0x108   :  { %781 = vmatpush.msra.mxu0 %v1997_v26  ;;  %801 = vmatpush.msrb.mxu1 %v2055_v36  ;;  %v3601_v26 = vld [vmem:[#allocation10_spill] sm:$0xff] }
 0x109   :  { %821 = vmatpush.msrb.mxu2 %v2076_v39  ;;  %841 = vmatpush.msrb.mxu3 %v2112_v45  ;;  %v3610_v36 = vld [vmem:[#allocation22_spill] sm:$0xff]  ;;  %v3613_v39 = vld [vmem:[#allocation21_spill] sm:$0xff]  ;;  %v3619_v45 = vld [vmem:[#allocation15_spill] sm:$0xff] }
 0x10a   :  { %782 = vmatpush.msra.mxu0 %v2016_v29  ;;  %802 = vmatpush.msrb.mxu1 %v2071_v38  ;;  %v3604_v29 = vld [vmem:[#allocation9_spill] sm:$0xff] }
 0x10b   :  { %822 = vmatpush.msrb.mxu2 %v2100_v43  ;;  %842 = vmatpush.msrb.mxu3 %v2134_v49  ;;  %v3612_v38 = vld [vmem:[#allocation17_spill] sm:$0xff]  ;;  %v3617_v43 = vld [vmem:[#allocation24_spill] sm:$0xff] }
 0x10c   :  { %783 = vmatpush.msra.mxu0 %v2039_v33  ;;  %803 = vmatpush.msrb.mxu1 %v2095_v42  ;;  %v3608_v33 = vld [vmem:[#allocation13_spill] sm:$0xff]  ;;  %v3616_v42 = vld [vmem:[#allocation20_spill] sm:$0xff] }
 0x10d   :  { %823 = vmatpush.msrb.mxu2 %v2124_v47  ;;  %843 = vmatpush.msrb.mxu3 %v2167_v54  ;;  %v3621_v47 = vld [vmem:[#allocation26_spill] sm:$0xff]  ;;  %v3622_v49 = vld [vmem:[#allocation28_spill] sm:$0xff] }
 0x10e   :  { %784 = vmatpush.msra.mxu0 %v2063_v37  ;;  %804 = vmatpush.msrb.mxu1 %v2119_v46  ;;  %v3611_v37 = vld [vmem:[#allocation8_spill] sm:$0xff]  ;;  %v3620_v46 = vld [vmem:[#allocation23_spill] sm:$0xff] }
 0x10f   :  { %824 = vmatpush.msrb.mxu2 %v2154_v52  ;;  %844 = vmatpush.msrb.mxu3 %v2191_v58  ;;  %v3623_v52 = vld [vmem:[#allocation30_spill] sm:$0xff]  ;;  %v3624_v54 = vld [vmem:[#allocation32_spill] sm:$0xff] }
 0x110   :  { %785 = vmatpush.msra.mxu0 %v2083_v40  ;;  %805 = vmatpush.msrb.mxu1 %v2149_v51  ;;  %v3614_v40 = vld [vmem:[#allocation25_spill] sm:$0xff] }
 0x111   :  { %825 = vmatpush.msrb.mxu2 %v2179_v56  ;;  %845 = vmatpush.msrb.mxu3 %v2213_v62 }
 0x112   :  { %786 = vmatpush.msra.mxu0 %v2106_v44  ;;  %806 = vmatpush.msrb.mxu1 %v2174_v55  ;;  %v3618_v44 = vld [vmem:[#allocation27_spill] sm:$0xff] }
 0x113   :  { %826 = vmatpush.msrb.mxu2 %v2203_v60  ;;  %846 = vmatpush.msrb.mxu3 %v2246_v3  ;;  %v3625_v60 = vld [vmem:[#allocation33_spill] sm:$0xff] }
 0x114   :  { %787 = vmatpush.msra.mxu0 %v2141_v50  ;;  %807 = vmatpush.msrb.mxu1 %v2198_v59 }
 0x115   :  { %827 = vmatpush.msrb.mxu2 %v2233_v1  ;;  %847 = vmatpush.msrb.mxu3 %v3598_v19 }
 0x116   :  { %788 = vmatpush.msra.mxu0 %v3599_v24  ;;  %808 = vmatpush.msrb.mxu1 %v3600_v25 }
 0x117   :  { %828 = vmatpush.msrb.mxu2 %v3601_v26  ;;  %848 = vmatpush.msrb.mxu3 %v3602_v27 }
 0x118   :  { %789 = vmatpush.msra.mxu0 %v3603_v28  ;;  %809 = vmatpush.msrb.mxu1 %v3604_v29 }
 0x119   :  { %829 = vmatpush.msrb.mxu2 %v3605_v30  ;;  %849 = vmatpush.msrb.mxu3 %v3606_v31 }
 0x11a   :  { %790 = vmatpush.msra.mxu0 %v3607_v32  ;;  %810 = vmatpush.msrb.mxu1 %v3608_v33 }
 0x11b   :  { %830 = vmatpush.msrb.mxu2 %v3609_v34  ;;  %850 = vmatpush.msrb.mxu3 %v3610_v36 }
 0x11c   :  { %791 = vmatpush.msra.mxu0 %v3611_v37  ;;  %811 = vmatpush.msrb.mxu1 %v3612_v38 }
 0x11d   :  { %831 = vmatpush.msrb.mxu2 %v3613_v39  ;;  %851 = vmatpush.msrb.mxu3 %v3614_v40  ;;  %v314_v39 = vld [vmem:[%s3441_s1 + $0x8] sm:$0xff] }
 0x11e   :  { %792 = vmatpush.msra.mxu0 %v3615_v41  ;;  %812 = vmatpush.msrb.mxu1 %v3616_v42 }
 0x11f   :  { %832 = vmatpush.msrb.mxu2 %v3617_v43  ;;  %852 = vmatpush.msrb.mxu3 %v3618_v44 }
 0x120   :  { %793 = vmatpush.msra.mxu0 %v3619_v45  ;;  %813 = vmatpush.msrb.mxu1 %v3620_v46 }
 0x121   :  { %833 = vmatpush.msrb.mxu2 %v3621_v47  ;;  %853 = vmatpush.msrb.mxu3 %v3622_v49 }
 0x17d   :  { %v489_v50 = vpop.f32.mrf.mxu0  ;;  %v509_v51 = vpop.f32.mrf.mxu1 }
 0x17e   :  { %v552_v53 = vadd.f32 %v489_v50, %v3623_v52  ;;  %v553_v55 = vadd.f32 %v509_v51, %v3624_v54 }
 0x180   :  { %v1621_v56 = vmul.f32 -1.442695, %v552_v53  ;;  %v1622_v58 = vmul.f32 -1.442695, %v553_v55 }
 0x182   :  { %1672 = vpow2.f32 %v1621_v56 }
 0x183   :  { %1674 = vpow2.f32 %v1622_v58 }
 0x184   :  { %v529_v59 = vpop.f32.mrf.mxu2  ;;  %v549_v4 = vpop.f32.mrf.mxu3 }
 0x185   :  { %v554_v62 = vadd.f32 %v529_v59, %v3625_v60  ;;  %v555_v35 = vadd.f32 %v549_v4, %v3626_v11  ;;  %v2712_v60 = vld [vmem:[%s3439_s3 + $0x1f0] sm:$0xff]  ;;  %v2754_v4 = vld [vmem:[%s3439_s3 + $0x1a8] sm:$0xff] }
 0x186   :  { %v2778_v11 = vld [vmem:[%s3439_s3 + $0x188] sm:$0xff] }
 0x187   :  { %v1623_v1 = vmul.f32 -1.442695, %v554_v62  ;;  %v2718_v62 = vld [vmem:[%s3439_s3 + $0x1f8] sm:$0xff] }
 0x188   :  { %v1673_v3 = vpop.eup %1672 }
 0x189   :  { %v1675_v10 = vpop.eup %1674  ;;  %v565_v7 = vadd.f32 1.0, %v1673_v3  ;;  %1676 = vpow2.f32 %v1623_v1  ;;  %v2724_v1 = vld [vmem:[%s3439_s3 + $0x1c0] sm:$0xff]  ;;  %v2730_v3 = vld [vmem:[%s3439_s3 + $0x1c8] sm:$0xff] }
 0x18a   :  { %v566_v5 = vadd.f32 1.0, %v1675_v10  ;;  %v2736_v10 = vld [vmem:[%s3439_s3 + $0x1d0] sm:$0xff] }
 0x18b   :  { %1678 = vrcp.f32 %v565_v7  ;;  %v579_v23 = vand.u32 2147483648, %v565_v7  ;;  %v577_v48 = vand.u32 2147483647, %v565_v7  ;;  %vm573_vm15 = vweird.f32 %v565_v7 }
 0x18c   :  { %1680 = vrcp.f32 %v566_v5  ;;  %v594_v14 = vand.u32 2147483648, %v566_v5  ;;  %v592_v12 = vand.u32 2147483647, %v566_v5  ;;  %vm588_vm0 = vweird.f32 %v566_v5 }
 0x18d   :  { %v580_v22 = vor.u32 1.1754944e-38, %v579_v23  ;;  %vm578_vm3 = vcmp.eq.f32.partialorder %v577_v48, 8.507059e+37  ;;  %v2820_v23 = vld [vmem:[%s3439_s3 + $0x140] sm:$0xff]  ;;  %v2838_v48 = vld [vmem:[%s3439_s3 + $0x158] sm:$0xff] }
 0x18e   :  { %v595_v24 = vor.u32 1.1754944e-38, %v594_v14  ;;  %vm593_vm4 = vcmp.eq.f32.partialorder %v592_v12, 8.507059e+37  ;;  %v2826_v14 = vld [vmem:[%s3439_s3 + $0x148] sm:$0xff] }
 0x18f   :  { %v1677_v20 = vpop.eup %1676  ;;  %v2850_v12 = vld [vmem:[%s3439_s3 + $0x128] sm:$0xff] }
 0x190   :  { %v567_v21 = vadd.f32 1.0, %v1677_v20  ;;  %v2760_v20 = vld [vmem:[%s3439_s3 + $0x1b0] sm:$0xff] }
 0x191   :  { %v1679_v18 = vpop.eup %1678 }
 0x192   :  { %v1681_v6 = vpop.eup %1680  ;;  %v569_v17 = vmul.f32 %v1679_v18, %v565_v7  ;;  %1682 = vrcp.f32 %v567_v21  ;;  %vm574_vm13 = vweird.f32 %v1679_v18  ;;  %v609_v41 = vand.u32 2147483648, %v567_v21  ;;  %v2742_v7 = vld [vmem:[%s3439_s3 + $0x1d8] sm:$0xff] }
 0x193   :  { %v584_v15 = vmul.f32 %v1681_v6, %v566_v5  ;;  %1684 = vtanh.f32 %v555_v35  ;;  %vm589_vm14 = vweird.f32 %v1681_v6  ;;  %vm575_vm1 = vmor %vm573_vm15, %vm574_vm13  ;;  %vm603_vm6 = vweird.f32 %v567_v21  ;;  %v2748_v5 = vld [vmem:[%s3439_s3 + $0x1a0] sm:$0xff]  ;;  %v2784_v35 = vld [vmem:[%s3439_s3 + $0x190] sm:$0xff] }
 0x194   :  { %v570_v13 = vsub.f32 1.0, %v569_v17  ;;  %vm590_vm2 = vmor %vm588_vm0, %vm589_vm14  ;;  %v607_v45 = vand.u32 2147483647, %v567_v21  ;;  %v610_v51 = vor.u32 1.1754944e-38, %v609_v41  ;;  %v2796_v17 = vld [vmem:[%s3439_s3 + $0x160] sm:$0xff] }
 0x195   :  { %v585_v61 = vsub.f32 1.0, %v584_v15  ;;  %v2802_v15 = vld [vmem:[%s3439_s3 + $0x168] sm:$0xff]  ;;  %v2964_v41 = vld [vmem:[%s3439_s3 + $0x80] sm:$0xff] }
 0x196   :  { %v571_v9 = vmul.f32 %v1679_v18, %v570_v13  ;;  %vm608_vm8 = vcmp.eq.f32.partialorder %v607_v45, 8.507059e+37  ;;  %v2808_v13 = vld [vmem:[%s3439_s3 + $0x170] sm:$0xff]  ;;  %3634 = vst [vmem:[#allocation14_spill] sm:$0xff] %v2964_v41 }
 0x197   :  { %v586_v16 = vmul.f32 %v1681_v6, %v585_v61  ;;  %v2814_v61 = vld [vmem:[%s3439_s3 + $0x178] sm:$0xff]  ;;  %v2976_v45 = vld [vmem:[%s3439_s3 + $0x90] sm:$0xff] }
 0x198   :  { %v1683_v8 = vpop.eup %1682  ;;  %v572_v0 = vadd.f32 %v1679_v18, %v571_v9  ;;  %v2832_v9 = vld [vmem:[%s3439_s3 + $0x150] sm:$0xff]  ;;  %3636 = vst [vmem:[#allocation6_spill] sm:$0xff] %v2976_v45 }
 0x199   :  { %v599_v57 = vmul.f32 %v1683_v8, %v567_v21  ;;  %v587_v19 = vadd.f32 %v1681_v6, %v586_v16  ;;  %v1685_v26 = vpop.eup %1684  ;;  %vm604_vm5 = vweird.f32 %v1683_v8  ;;  %v2766_v21 = vld [vmem:[%s3439_s3 + $0x1b8] sm:$0xff]  ;;  %v2844_v16 = vld [vmem:[%s3439_s3 + $0x120] sm:$0xff] }
 0x19a   :  { %v576_v25 = vsel %vm575_vm1, %v1679_v18, %v572_v0  ;;  %vm605_vm7 = vmor %vm603_vm6, %vm604_vm5  ;;  %v2772_v18 = vld [vmem:[%s3439_s3 + $0x180] sm:$0xff]  ;;  %v2862_v0 = vld [vmem:[%s3439_s3 + $0x138] sm:$0xff] }
 0x19b   :  { %v600_v27 = vsub.f32 1.0, %v599_v57  ;;  %v581_v28 = vsel %vm578_vm3, %v580_v22, %v576_v25  ;;  %v591_v29 = vsel %vm590_vm2, %v1681_v6, %v587_v19  ;;  %v2790_v6 = vld [vmem:[%s3439_s3 + $0x198] sm:$0xff]  ;;  %v2868_v57 = vld [vmem:[%s3439_s3 + $0x100] sm:$0xff]  ;;  %v2874_v22 = vld [vmem:[%s3439_s3 + $0x108] sm:$0xff] }
 0x19c   :  { %v596_v30 = vsel %vm593_vm4, %v595_v24, %v591_v29  ;;  %v615_v32 = vmul.f32 %v1685_v26, %v581_v28  ;;  %v2880_v19 = vld [vmem:[%s3439_s3 + $0x110] sm:$0xff]  ;;  %v2886_v24 = vld [vmem:[%s3439_s3 + $0x118] sm:$0xff]  ;;  %v2892_v25 = vld [vmem:[%s3439_s3 + $0xe0] sm:$0xff] }
 0x19d   :  { %v601_v33 = vmul.f32 %v1683_v8, %v600_v27  ;;  %v614_v34 = vmul.f32 %v596_v30, %v2605_v2  ;;  %v2898_v26 = vld [vmem:[%s3439_s3 + $0xe8] sm:$0xff]  ;;  %v2904_v27 = vld [vmem:[%s3439_s3 + $0xf0] sm:$0xff]  ;;  %v2910_v28 = vld [vmem:[%s3439_s3 + $0xf8] sm:$0xff] }
 0x19e   :  { %v2916_v29 = vld [vmem:[%s3439_s3 + $0xc0] sm:$0xff]  ;;  %v2922_v30 = vld [vmem:[%s3439_s3 + $0xc8] sm:$0xff] }
 0x19f   :  { %v616_v37 = vadd.f32 %v615_v32, %v614_v34  ;;  %v602_v38 = vadd.f32 %v1683_v8, %v601_v33  ;;  %3627 = vst [vmem:[#allocation12_spill] sm:$0xff] %v2922_v30  ;;  %v2928_v32 = vld [vmem:[%s3439_s3 + $0xd0] sm:$0xff]  ;;  %v2934_v33 = vld [vmem:[%s3439_s3 + $0xd8] sm:$0xff]  ;;  %v2940_v34 = vld [vmem:[%s3439_s3 + $0xa0] sm:$0xff] }
 0x1a0   :  { %3628 = vst [vmem:[#allocation4_spill] sm:$0xff] %v2928_v32 }
 0x1a1   :  { %1686 = vtanh.f32 %v616_v37  ;;  %v622_v42 = vsub.f32 %v616_v37, %v2605_v2  ;;  %v606_v50 = vsel %vm605_vm7, %v1683_v8, %v602_v38  ;;  %v2856_v8 = vld [vmem:[%s3439_s3 + $0x130] sm:$0xff]  ;;  %3629 = vst [vmem:[#allocation7_spill] sm:$0xff] %v2934_v33  ;;  %v2946_v37 = vld [vmem:[%s3439_s3 + $0xa8] sm:$0xff] }
 0x1a2   :  { %v611_v54 = vsel %vm608_vm8, %v610_v51, %v606_v50  ;;  %3630 = vst [vmem:[#allocation10_spill] sm:$0xff] %v2940_v34  ;;  %v2952_v38 = vld [vmem:[%s3439_s3 + $0xb0] sm:$0xff]  ;;  %v2989_v50 = vld [vmem:[%s3439_s3 + $0x68] sm:$0xff] }
 0x1a3   :  { %v623_v46 = vmul.f32 %v622_v42, %v314_v39  ;;  %3631 = vst [vmem:[#allocation16_spill] sm:$0xff] %v2946_v37  ;;  %v2970_v42 = vld [vmem:[%s3439_s3 + $0x88] sm:$0xff]  ;;  %v2995_v51 = vld [vmem:[%s3439_s3 + $0x70] sm:$0xff] }
 0x1a4   :  { %3632 = vst [vmem:[#allocation5_spill] sm:$0xff] %v2952_v38 }
 0x1a5   :  { %v2687_v52 = vadd.f32 %v623_v46, %v2605_v2  ;;  %v2700_v2 = vld [vmem:[%s3439_s3 + $0x1e0] sm:$0xff]  ;;  %3635 = vst [vmem:[#allocation19_spill] sm:$0xff] %v2970_v42 }
 0x1a6   :  { %v2983_v46 = vld [vmem:[%s3439_s3 + $0x60] sm:$0xff]  ;;  %3638 = vst [vmem:[#allocation18_spill] sm:$0xff] %v2989_v50 }
 0x1a7   :  { %v1687_v53 = vpop.eup %1686  ;;  %3637 = vst [vmem:[#allocation13_spill] sm:$0xff] %v2983_v46 }
 0x1a8   :  { %v618_v55 = vmul.f32 %v1687_v53, %v611_v54  ;;  %3639 = vst [vmem:[#allocation22_spill] sm:$0xff] %v2995_v51  ;;  %v3008_v53 = vld [vmem:[%s3439_s3 + $0x48] sm:$0xff]  ;;  %v3014_v54 = vld [vmem:[%s3439_s3 + $0x50] sm:$0xff] }
 0x1a9   :  { %3641 = vst [vmem:[#allocation17_spill] sm:$0xff] %v3008_v53 }
 0x1aa   :  { %v619_v56 = vsub.f32 %v618_v55, %v2607_v63  ;;  %3642 = vst [vmem:[#allocation21_spill] sm:$0xff] %v3014_v54  ;;  %v3027_v55 = vld [vmem:[%s3439_s3 + $0x28] sm:$0xff] }
 0x1ab   :  { %3644 = vst [vmem:[#allocation11_spill] sm:$0xff] %v3027_v55 }
 0x1ac   :  { %v620_v58 = vmul.f32 %v619_v56, %v314_v39  ;;  %v2958_v39 = vld [vmem:[%s3439_s3 + $0xb8] sm:$0xff]  ;;  %v3041_v56 = vld [vmem:[%s3439_s3 + $0x8] sm:$0xff] }
 0x1ad   :  { %3633 = vst [vmem:[#allocation9_spill] sm:$0xff] %v2958_v39 }
 0x1ae   :  { %v2691_v59 = vadd.f32 %v620_v58, %v2607_v63  ;;  %v2706_v63 = vld [vmem:[%s3439_s3 + $0x1e8] sm:$0xff]  ;;  %3646 = vst [vmem:[#allocation24_spill] sm:$0xff] %v3041_v56 }
 0x1af   :  { %v3647_v58 = vld [vmem:[#allocation31_spill] sm:$0xff] }
 0x1b0   :  { %641 = vmatmul.f32.vlgmr.msrb.gmra.mxu0 %v2691_v59  ;;  %661 = vmatmul.f32.vlgmr.msra.gmra.mxu1 %v2691_v59 }
 0x1b1   :  { %681 = vmatmul.f32.vlgmr.msra.gmra.mxu2 %v2691_v59  ;;  %701 = vmatmul.f32.vlgmr.msra.gmra.mxu3 %v2691_v59 }
 0x1b2   :  { %931 = vmatpush.msrb.mxu0 %v2700_v2  ;;  %951 = vmatpush.msra.mxu1 %v2706_v63 }
 0x1b3   :  { %971 = vmatpush.msra.mxu2 %v2712_v60  ;;  %991 = vmatpush.msra.mxu3 %v2718_v62 }
 0x1b4   :  { %932 = vmatpush.msrb.mxu0 %v2724_v1  ;;  %952 = vmatpush.msra.mxu1 %v2730_v3 }
 0x1b5   :  { %972 = vmatpush.msra.mxu2 %v2736_v10  ;;  %992 = vmatpush.msra.mxu3 %v2742_v7 }
 0x1b6   :  { %933 = vmatpush.msrb.mxu0 %v2748_v5  ;;  %953 = vmatpush.msra.mxu1 %v2754_v4 }
 0x1b7   :  { %973 = vmatpush.msra.mxu2 %v2760_v20  ;;  %993 = vmatpush.msra.mxu3 %v2766_v21 }
 0x1b8   :  { %934 = vmatpush.msrb.mxu0 %v2772_v18  ;;  %954 = vmatpush.msra.mxu1 %v2778_v11 }
 0x1b9   :  { %974 = vmatpush.msra.mxu2 %v2784_v35  ;;  %994 = vmatpush.msra.mxu3 %v2790_v6 }
 0x1ba   :  { %935 = vmatpush.msrb.mxu0 %v2796_v17  ;;  %955 = vmatpush.msra.mxu1 %v2802_v15 }
 0x1bb   :  { %975 = vmatpush.msra.mxu2 %v2808_v13  ;;  %995 = vmatpush.msra.mxu3 %v2814_v61 }
 0x1bc   :  { %936 = vmatpush.msrb.mxu0 %v2820_v23  ;;  %956 = vmatpush.msra.mxu1 %v2826_v14 }
 0x1bd   :  { %976 = vmatpush.msra.mxu2 %v2832_v9  ;;  %996 = vmatpush.msra.mxu3 %v2838_v48 }
 0x1be   :  { %937 = vmatpush.msrb.mxu0 %v2844_v16  ;;  %957 = vmatpush.msra.mxu1 %v2850_v12 }
 0x1bf   :  { %977 = vmatpush.msra.mxu2 %v2856_v8  ;;  %997 = vmatpush.msra.mxu3 %v2862_v0 }
 0x1c0   :  { %938 = vmatpush.msrb.mxu0 %v2868_v57  ;;  %958 = vmatpush.msra.mxu1 %v2874_v22 }
 0x1c1   :  { %978 = vmatpush.msra.mxu2 %v2880_v19  ;;  %998 = vmatpush.msra.mxu3 %v2886_v24 }
 0x1c2   :  { %939 = vmatpush.msrb.mxu0 %v2892_v25  ;;  %959 = vmatpush.msra.mxu1 %v2898_v26 }
 0x1c3   :  { %979 = vmatpush.msra.mxu2 %v2904_v27  ;;  %999 = vmatpush.msra.mxu3 %v2910_v28 }
 0x1c4   :  { %940 = vmatpush.msrb.mxu0 %v2916_v29  ;;  %960 = vmatpush.msra.mxu1 %v2922_v30 }
 0x1c5   :  { %980 = vmatpush.msra.mxu2 %v2928_v32  ;;  %1000 = vmatpush.msra.mxu3 %v2934_v33 }
 0x1c6   :  { %941 = vmatpush.msrb.mxu0 %v2940_v34  ;;  %961 = vmatpush.msra.mxu1 %v2946_v37 }
 0x1c7   :  { %981 = vmatpush.msra.mxu2 %v2952_v38  ;;  %1001 = vmatpush.msra.mxu3 %v2958_v39 }
 0x1c8   :  { %942 = vmatpush.msrb.mxu0 %v2964_v41  ;;  %962 = vmatpush.msra.mxu1 %v2970_v42 }
 0x1c9   :  { %982 = vmatpush.msra.mxu2 %v2976_v45  ;;  %1002 = vmatpush.msra.mxu3 %v3606_v31  ;;  %v3002_v31 = vld [vmem:[%s3439_s3 + $0x40] sm:$0xff] }
 0x1ca   :  { %943 = vmatpush.msrb.mxu0 %v2983_v46  ;;  %963 = vmatpush.msra.mxu1 %v2989_v50  ;;  %3640 = vst [vmem:[#allocation8_spill] sm:$0xff] %v3002_v31 }
 0x1cb   :  { %983 = vmatpush.msra.mxu2 %v2995_v51  ;;  %1003 = vmatpush.msra.mxu3 %v3610_v36  ;;  %v3021_v36 = vld [vmem:[%s3439_s3 + $0x20] sm:$0xff]  ;;  %v3649_v51 = vld [vmem:[#allocation37_spill] sm:$0xff] }
 0x1cc   :  { %944 = vmatpush.msrb.mxu0 %v3002_v31  ;;  %964 = vmatpush.msra.mxu1 %v3008_v53  ;;  %3643 = vst [vmem:[#allocation25_spill] sm:$0xff] %v3021_v36 }
 0x1cd   :  { %984 = vmatpush.msra.mxu2 %v3014_v54  ;;  %1004 = vmatpush.msra.mxu3 %v3614_v40  ;;  %v3035_v40 = vld [vmem:[%s3439_s3] sm:$0xff] }
 0x1ce   :  { %945 = vmatpush.msrb.mxu0 %v3021_v36  ;;  %965 = vmatpush.msra.mxu1 %v3027_v55  ;;  %3645 = vst [vmem:[#allocation20_spill] sm:$0xff] %v3035_v40  ;;  %v3648_v36 = vld [vmem:[#allocation36_spill] sm:$0xff] }
 0x1cf   :  { %985 = vmatpush.msra.mxu2 %v3617_v43  ;;  %1005 = vmatpush.msra.mxu3 %v3618_v44 }
 0x1d0   :  { %946 = vmatpush.msrb.mxu0 %v3035_v40  ;;  %966 = vmatpush.msra.mxu1 %v3041_v56 }
 0x1d1   :  { %986 = vmatpush.msra.mxu2 %v3621_v47  ;;  %1006 = vmatpush.msra.mxu3 %v3622_v49 }
 0x22d   :  { %v642_v43 = vpop.f32.mrf.mxu0  ;;  %v662_v44 = vpop.f32.mrf.mxu1 }
 0x22e   :  { %v705_v55 = vadd.f32 %v642_v43, %v3647_v58  ;;  %v706_v54 = vadd.f32 %v662_v44, %v3648_v36  ;;  %v3650_v36 = vld [vmem:[#allocation38_spill] sm:$0xff] }
 0x230   :  { %v1624_v53 = vmul.f32 -1.442695, %v705_v55  ;;  %v1625_v31 = vmul.f32 -1.442695, %v706_v54 }
 0x232   :  { %1688 = vpow2.f32 %v1624_v53 }
 0x233   :  { %1690 = vpow2.f32 %v1625_v31 }
 0x234   :  { %v682_v40 = vpop.f32.mrf.mxu2  ;;  %v702_v49 = vpop.f32.mrf.mxu3 }
 0x235   :  { %v707_v50 = vadd.f32 %v682_v40, %v3649_v51  ;;  %v708_v55 = vadd.f32 %v702_v49, %v3650_v36 }
 0x237   :  { %v1626_v46 = vmul.f32 -1.442695, %v707_v50 }
 0x238   :  { %v1689_v45 = vpop.eup %1688 }
 0x239   :  { %v1691_v56 = vpop.eup %1690  ;;  %v718_v42 = vadd.f32 1.0, %v1689_v45  ;;  %1692 = vpow2.f32 %v1626_v46 }
 0x23a   :  { %v719_v47 = vadd.f32 1.0, %v1691_v56 }
 0x23b   :  { %1694 = vrcp.f32 %v718_v42  ;;  %v732_v50 = vand.u32 2147483648, %v718_v42  ;;  %v730_v46 = vand.u32 2147483647, %v718_v42  ;;  %vm726_vm11 = vweird.f32 %v718_v42 }
 0x23c   :  { %1696 = vrcp.f32 %v719_v47  ;;  %v747_v40 = vand.u32 2147483648, %v719_v47  ;;  %v745_v39 = vand.u32 2147483647, %v719_v47  ;;  %vm741_vm12 = vweird.f32 %v719_v47 }
 0x23d   :  { %v733_v36 = vor.u32 1.1754944e-38, %v732_v50  ;;  %vm731_vm15 = vcmp.eq.f32.partialorder %v730_v46, 8.507059e+37  ;;  %v315_v50 = vld [vmem:[%s3441_s1 + $0x10] sm:$0xff] }
 0x23e   :  { %vm746_vm0 = vcmp.eq.f32.partialorder %v745_v39, 8.507059e+37 }
 0x23f   :  { %v1693_v41 = vpop.eup %1692 }
 0x240   :  { %v720_v43 = vadd.f32 1.0, %v1693_v41 }
 0x241   :  { %v1695_v58 = vpop.eup %1694 }
 0x242   :  { %v1697_v54 = vpop.eup %1696  ;;  %v722_v53 = vmul.f32 %v1695_v58, %v718_v42  ;;  %1698 = vrcp.f32 %v720_v43  ;;  %vm727_vm9 = vweird.f32 %v1695_v58  ;;  %vm756_vm2 = vweird.f32 %v720_v43 }
 0x243   :  { %v737_v31 = vmul.f32 %v1697_v54, %v719_v47  ;;  %1700 = vtanh.f32 %v708_v55  ;;  %vm742_vm10 = vweird.f32 %v1697_v54  ;;  %vm728_vm13 = vmor %vm726_vm11, %vm727_vm9  ;;  %v760_v46 = vand.u32 2147483647, %v720_v43 }
 0x244   :  { %v723_v44 = vsub.f32 1.0, %v722_v53  ;;  %vm743_vm14 = vmor %vm741_vm12, %vm742_vm10  ;;  %v748_v53 = vor.u32 1.1754944e-38, %v747_v40  ;;  %v762_v40 = vand.u32 2147483648, %v720_v43 }
 0x245   :  { %v738_v51 = vsub.f32 1.0, %v737_v31  ;;  %vm761_vm4 = vcmp.eq.f32.partialorder %v760_v46, 8.507059e+37  ;;  %v3667_v46 = vld [vmem:[#allocation17_spill] sm:$0xff] }
 0x246   :  { %v724_v45 = vmul.f32 %v1695_v58, %v723_v44  ;;  %v763_v39 = vor.u32 1.1754944e-38, %v762_v40  ;;  %v3125_v40 = vld [vmem:[%s3439_s3 + $0x78] sm:$0xff] }
 0x247   :  { %v739_v56 = vmul.f32 %v1697_v54, %v738_v51  ;;  %3665 = vst [vmem:[#allocation15_spill] sm:$0xff] %v3125_v40 }
 0x248   :  { %v1699_v38 = vpop.eup %1698  ;;  %v725_v41 = vadd.f32 %v1695_v58, %v724_v45 }
 0x249   :  { %v752_v49 = vmul.f32 %v1699_v38, %v720_v43  ;;  %v740_v37 = vadd.f32 %v1697_v54, %v739_v56  ;;  %v1701_v55 = vpop.eup %1700  ;;  %vm757_vm1 = vweird.f32 %v1699_v38  ;;  %v3654_v43 = vld [vmem:[#allocation10_spill] sm:$0xff] }
 0x24a   :  { %v729_v31 = vsel %vm728_vm13, %v1695_v58, %v725_v41  ;;  %vm758_vm3 = vmor %vm756_vm2, %vm757_vm1 }
 0x24b   :  { %v753_v34 = vsub.f32 1.0, %v752_v49  ;;  %v734_v44 = vsel %vm731_vm15, %v733_v36, %v729_v31  ;;  %v744_v33 = vsel %vm743_vm14, %v1697_v54, %v740_v37  ;;  %v3655_v36 = vld [vmem:[#allocation16_spill] sm:$0xff]  ;;  %v3657_v31 = vld [vmem:[#allocation9_spill] sm:$0xff] }
 0x24c   :  { %v749_v51 = vsel %vm746_vm0, %v748_v53, %v744_v33  ;;  %v768_v32 = vmul.f32 %v1701_v55, %v734_v44  ;;  %v3656_v53 = vld [vmem:[#allocation5_spill] sm:$0xff]  ;;  %v3658_v55 = vld [vmem:[#allocation14_spill] sm:$0xff]  ;;  %v3659_v44 = vld [vmem:[#allocation19_spill] sm:$0xff] }
 0x24d   :  { %v754_v30 = vmul.f32 %v1699_v38, %v753_v34  ;;  %v767_v45 = vmul.f32 %v749_v51, %v2687_v52  ;;  %v3660_v51 = vld [vmem:[#allocation6_spill] sm:$0xff] }
 0x24f   :  { %v769_v42 = vadd.f32 %v768_v32, %v767_v45  ;;  %v755_v47 = vadd.f32 %v1699_v38, %v754_v30  ;;  %v3116_v45 = vld [vmem:[%s3439_s3 + $0x98] sm:$0xff] }
 0x250   :  { %3661 = vst [vmem:[#allocation27_spill] sm:$0xff] %v3116_v45 }
 0x251   :  { %1702 = vtanh.f32 %v769_v42  ;;  %v775_v58 = vsub.f32 %v769_v42, %v2687_v52  ;;  %v759_v33 = vsel %vm758_vm3, %v1699_v38, %v755_v47  ;;  %v3653_v38 = vld [vmem:[#allocation7_spill] sm:$0xff]  ;;  %v3662_v42 = vld [vmem:[#allocation13_spill] sm:$0xff]  ;;  %v3663_v47 = vld [vmem:[#allocation18_spill] sm:$0xff] }
 0x252   :  { %v764_v32 = vsel %vm761_vm4, %v763_v39, %v759_v33  ;;  %v3134_v33 = vld [vmem:[%s3439_s3 + $0x58] sm:$0xff] }
 0x253   :  { %v776_v37 = vmul.f32 %v775_v58, %v315_v50  ;;  %v3666_v58 = vld [vmem:[#allocation8_spill] sm:$0xff]  ;;  %3669 = vst [vmem:[#allocation23_spill] sm:$0xff] %v3134_v33  ;;  %v3670_v39 = vld [vmem:[#allocation25_spill] sm:$0xff] }
 0x255   :  { %v3056_v34 = vadd.f32 %v776_v37, %v2687_v52  ;;  %v3651_v52 = vld [vmem:[#allocation12_spill] sm:$0xff]  ;;  %v3668_v37 = vld [vmem:[#allocation21_spill] sm:$0xff] }
 0x257   :  { %v1703_v30 = vpop.eup %1702 }
 0x258   :  { %v771_v54 = vmul.f32 %v1703_v30, %v764_v32  ;;  %v3671_v30 = vld [vmem:[#allocation11_spill] sm:$0xff]  ;;  %v3142_v32 = vld [vmem:[%s3439_s3 + $0x30] sm:$0xff] }
 0x259   :  { %3672 = vst [vmem:[#allocation26_spill] sm:$0xff] %v3142_v32 }
 0x25a   :  { %v772_v56 = vsub.f32 %v771_v54, %v2691_v59  ;;  %v3148_v54 = vld [vmem:[%s3439_s3 + $0x38] sm:$0xff] }
 0x25b   :  { %3673 = vst [vmem:[#allocation28_spill] sm:$0xff] %v3148_v54 }
 0x25c   :  { %v773_v41 = vmul.f32 %v772_v56, %v315_v50  ;;  %v3664_v50 = vld [vmem:[#allocation22_spill] sm:$0xff]  ;;  %v3674_v56 = vld [vmem:[#allocation20_spill] sm:$0xff] }
 0x25e   :  { %v3060_v49 = vadd.f32 %v773_v41, %v2691_v59  ;;  %v3652_v59 = vld [vmem:[#allocation4_spill] sm:$0xff] }
 0x25f   :  { %v3675_v41 = vld [vmem:[#allocation24_spill] sm:$0xff] }
 0x260   :  { %794 = vmatmul.f32.vlgmr.msra.gmra.mxu0 %v3060_v49  ;;  %814 = vmatmul.f32.vlgmr.msrb.gmra.mxu1 %v3060_v49 }
 0x261   :  { %834 = vmatmul.f32.vlgmr.msrb.gmra.mxu2 %v3060_v49  ;;  %854 = vmatmul.f32.vlgmr.msrb.gmra.mxu3 %v3060_v49 }
 0x262   :  { %1084 = vmatpush.msra.mxu0 %v2700_v2  ;;  %1104 = vmatpush.msrb.mxu1 %v2706_v63 }
 0x263   :  { %1124 = vmatpush.msrb.mxu2 %v2712_v60  ;;  %1144 = vmatpush.msrb.mxu3 %v2718_v62 }
 0x264   :  { %1085 = vmatpush.msra.mxu0 %v2724_v1  ;;  %1105 = vmatpush.msrb.mxu1 %v2730_v3 }
 0x265   :  { %1125 = vmatpush.msrb.mxu2 %v2736_v10  ;;  %1145 = vmatpush.msrb.mxu3 %v2742_v7 }
 0x266   :  { %1086 = vmatpush.msra.mxu0 %v2748_v5  ;;  %1106 = vmatpush.msrb.mxu1 %v2754_v4 }
 0x267   :  { %1126 = vmatpush.msrb.mxu2 %v2760_v20  ;;  %1146 = vmatpush.msrb.mxu3 %v2766_v21 }
 0x268   :  { %1087 = vmatpush.msra.mxu0 %v2772_v18  ;;  %1107 = vmatpush.msrb.mxu1 %v2778_v11 }
 0x269   :  { %1127 = vmatpush.msrb.mxu2 %v2784_v35  ;;  %1147 = vmatpush.msrb.mxu3 %v2790_v6 }
 0x26a   :  { %1088 = vmatpush.msra.mxu0 %v2796_v17  ;;  %1108 = vmatpush.msrb.mxu1 %v2802_v15 }
 0x26b   :  { %1128 = vmatpush.msrb.mxu2 %v2808_v13  ;;  %1148 = vmatpush.msrb.mxu3 %v2814_v61 }
 0x26c   :  { %1089 = vmatpush.msra.mxu0 %v2820_v23  ;;  %1109 = vmatpush.msrb.mxu1 %v2826_v14 }
 0x26d   :  { %1129 = vmatpush.msrb.mxu2 %v2832_v9  ;;  %1149 = vmatpush.msrb.mxu3 %v2838_v48 }
 0x26e   :  { %1090 = vmatpush.msra.mxu0 %v2844_v16  ;;  %1110 = vmatpush.msrb.mxu1 %v2850_v12 }
 0x26f   :  { %1130 = vmatpush.msrb.mxu2 %v2856_v8  ;;  %1150 = vmatpush.msrb.mxu3 %v2862_v0 }
 0x270   :  { %1091 = vmatpush.msra.mxu0 %v2868_v57  ;;  %1111 = vmatpush.msrb.mxu1 %v2874_v22 }
 0x271   :  { %1131 = vmatpush.msrb.mxu2 %v2880_v19  ;;  %1151 = vmatpush.msrb.mxu3 %v2886_v24 }
 0x272   :  { %1092 = vmatpush.msra.mxu0 %v2892_v25  ;;  %1112 = vmatpush.msrb.mxu1 %v2898_v26 }
 0x273   :  { %1132 = vmatpush.msrb.mxu2 %v2904_v27  ;;  %1152 = vmatpush.msrb.mxu3 %v2910_v28 }
 0x274   :  { %1093 = vmatpush.msra.mxu0 %v2916_v29  ;;  %1113 = vmatpush.msrb.mxu1 %v3651_v52 }
 0x275   :  { %1133 = vmatpush.msrb.mxu2 %v3652_v59  ;;  %1153 = vmatpush.msrb.mxu3 %v3653_v38 }
 0x276   :  { %1094 = vmatpush.msra.mxu0 %v3654_v43  ;;  %1114 = vmatpush.msrb.mxu1 %v3655_v36 }
 0x277   :  { %1134 = vmatpush.msrb.mxu2 %v3656_v53  ;;  %1154 = vmatpush.msrb.mxu3 %v3657_v31 }
 0x278   :  { %1095 = vmatpush.msra.mxu0 %v3658_v55  ;;  %1115 = vmatpush.msrb.mxu1 %v3659_v44 }
 0x279   :  { %1135 = vmatpush.msrb.mxu2 %v3660_v51  ;;  %1155 = vmatpush.msrb.mxu3 %v3116_v45 }
 0x27a   :  { %1096 = vmatpush.msra.mxu0 %v3662_v42  ;;  %1116 = vmatpush.msrb.mxu1 %v3663_v47 }
 0x27b   :  { %1136 = vmatpush.msrb.mxu2 %v3664_v50  ;;  %1156 = vmatpush.msrb.mxu3 %v3125_v40  ;;  %v3680_v50 = vld [vmem:[#allocation41_spill] sm:$0xff] }
 0x27c   :  { %1097 = vmatpush.msra.mxu0 %v3666_v58  ;;  %1117 = vmatpush.msrb.mxu1 %v3667_v46 }
 0x27d   :  { %1137 = vmatpush.msrb.mxu2 %v3668_v37  ;;  %1157 = vmatpush.msrb.mxu3 %v3134_v33  ;;  %v3678_v33 = vld [vmem:[#allocation35_spill] sm:$0xff]  ;;  %v3679_v37 = vld [vmem:[#allocation40_spill] sm:$0xff] }
 0x27e   :  { %1098 = vmatpush.msra.mxu0 %v3670_v39  ;;  %1118 = vmatpush.msrb.mxu1 %v3671_v30  ;;  %v3156_v30 = vld [vmem:[%s3439_s3 + $0x10] sm:$0xff] }
 0x27f   :  { %1138 = vmatpush.msrb.mxu2 %v3142_v32  ;;  %1158 = vmatpush.msrb.mxu3 %v3148_v54  ;;  %3676 = vst [vmem:[#allocation30_spill] sm:$0xff] %v3156_v30  ;;  %v3162_v32 = vld [vmem:[%s3439_s3 + $0x18] sm:$0xff] }
 0x280   :  { %1099 = vmatpush.msra.mxu0 %v3674_v56  ;;  %1119 = vmatpush.msrb.mxu1 %v3675_v41  ;;  %3677 = vst [vmem:[#allocation32_spill] sm:$0xff] %v3162_v32 }
 0x281   :  { %1139 = vmatpush.msrb.mxu2 %v3156_v30  ;;  %1159 = vmatpush.msrb.mxu3 %v3162_v32 }
 0x2dd   :  { %v795_v39 = vpop.f32.mrf.mxu0  ;;  %v815_v54 = vpop.f32.mrf.mxu1 }
 0x2de   :  { %v858_v56 = vadd.f32 %v795_v39, %v3678_v33  ;;  %v859_v41 = vadd.f32 %v815_v54, %v3679_v37  ;;  %v3681_v37 = vld [vmem:[#allocation42_spill] sm:$0xff] }
 0x2e0   :  { %v1627_v46 = vmul.f32 -1.442695, %v858_v56  ;;  %v1628_v58 = vmul.f32 -1.442695, %v859_v41 }
 0x2e2   :  { %1704 = vpow2.f32 %v1627_v46 }
 0x2e3   :  { %1706 = vpow2.f32 %v1628_v58 }
 0x2e4   :  { %v835_v40 = vpop.f32.mrf.mxu2  ;;  %v855_v32 = vpop.f32.mrf.mxu3 }
 0x2e5   :  { %v860_v30 = vadd.f32 %v835_v40, %v3680_v50  ;;  %v861_v54 = vadd.f32 %v855_v32, %v3681_v37 }
 0x2e7   :  { %v1629_v47 = vmul.f32 -1.442695, %v860_v30 }
 0x2e8   :  { %v1705_v42 = vpop.eup %1704 }
 0x2e9   :  { %v1707_v45 = vpop.eup %1706  ;;  %v871_v51 = vadd.f32 1.0, %v1705_v42  ;;  %1708 = vpow2.f32 %v1629_v47 }
 0x2ea   :  { %v872_v44 = vadd.f32 1.0, %v1707_v45 }
 0x2eb   :  { %1710 = vrcp.f32 %v871_v51  ;;  %v885_v40 = vand.u32 2147483648, %v871_v51  ;;  %v883_v45 = vand.u32 2147483647, %v871_v51  ;;  %vm879_vm7 = vweird.f32 %v871_v51 }
 0x2ec   :  { %1712 = vrcp.f32 %v872_v44  ;;  %v900_v30 = vand.u32 2147483648, %v872_v44  ;;  %v898_v31 = vand.u32 2147483647, %v872_v44  ;;  %vm894_vm8 = vweird.f32 %v872_v44 }
 0x2ed   :  { %v886_v37 = vor.u32 1.1754944e-38, %v885_v40  ;;  %vm884_vm11 = vcmp.eq.f32.partialorder %v883_v45, 8.507059e+37  ;;  %v316_v40 = vld [vmem:[%s3441_s1 + $0x18] sm:$0xff] }
 0x2ee   :  { %vm899_vm12 = vcmp.eq.f32.partialorder %v898_v31, 8.507059e+37 }
 0x2ef   :  { %v1709_v55 = vpop.eup %1708 }
 0x2f0   :  { %v873_v33 = vadd.f32 1.0, %v1709_v55 }
 0x2f1   :  { %v1711_v39 = vpop.eup %1710 }
 0x2f2   :  { %v1713_v56 = vpop.eup %1712  ;;  %v875_v46 = vmul.f32 %v1711_v39, %v871_v51  ;;  %1714 = vrcp.f32 %v873_v33  ;;  %vm880_vm5 = vweird.f32 %v1711_v39  ;;  %vm909_vm14 = vweird.f32 %v873_v33 }
 0x2f3   :  { %v890_v58 = vmul.f32 %v1713_v56, %v872_v44  ;;  %1716 = vtanh.f32 %v861_v54  ;;  %vm895_vm6 = vweird.f32 %v1713_v56  ;;  %vm881_vm9 = vmor %vm879_vm7, %vm880_vm5  ;;  %v913_v45 = vand.u32 2147483647, %v873_v33 }
 0x2f4   :  { %v876_v41 = vsub.f32 1.0, %v875_v46  ;;  %vm896_vm10 = vmor %vm894_vm8, %vm895_vm6  ;;  %v901_v46 = vor.u32 1.1754944e-38, %v900_v30  ;;  %v915_v30 = vand.u32 2147483648, %v873_v33 }
 0x2f5   :  { %v891_v50 = vsub.f32 1.0, %v890_v58  ;;  %vm914_vm0 = vcmp.eq.f32.partialorder %v913_v45, 8.507059e+37  ;;  %v3698_v45 = vld [vmem:[#allocation17_spill] sm:$0xff] }
 0x2f6   :  { %v877_v42 = vmul.f32 %v1711_v39, %v876_v41  ;;  %v916_v31 = vor.u32 1.1754944e-38, %v915_v30  ;;  %v3696_v30 = vld [vmem:[#allocation15_spill] sm:$0xff] }
 0x2f7   :  { %v892_v47 = vmul.f32 %v1713_v56, %v891_v50 }
 0x2f8   :  { %v1715_v53 = vpop.eup %1714  ;;  %v878_v55 = vadd.f32 %v1711_v39, %v877_v42 }
 0x2f9   :  { %v905_v32 = vmul.f32 %v1715_v53, %v873_v33  ;;  %v893_v36 = vadd.f32 %v1713_v56, %v892_v47  ;;  %v1717_v54 = vpop.eup %1716  ;;  %vm910_vm13 = vweird.f32 %v1715_v53  ;;  %v3685_v33 = vld [vmem:[#allocation10_spill] sm:$0xff] }
 0x2fa   :  { %v882_v58 = vsel %vm881_vm9, %v1711_v39, %v878_v55  ;;  %vm911_vm15 = vmor %vm909_vm14, %vm910_vm13 }
 0x2fb   :  { %v906_v43 = vsub.f32 1.0, %v905_v32  ;;  %v887_v41 = vsel %vm884_vm11, %v886_v37, %v882_v58  ;;  %v897_v38 = vsel %vm896_vm10, %v1713_v56, %v893_v36  ;;  %v3686_v37 = vld [vmem:[#allocation16_spill] sm:$0xff]  ;;  %v3688_v58 = vld [vmem:[#allocation9_spill] sm:$0xff] }
 0x2fc   :  { %v902_v50 = vsel %vm899_vm12, %v901_v46, %v897_v38  ;;  %v921_v59 = vmul.f32 %v1717_v54, %v887_v41  ;;  %v3687_v46 = vld [vmem:[#allocation5_spill] sm:$0xff]  ;;  %v3689_v54 = vld [vmem:[#allocation14_spill] sm:$0xff]  ;;  %v3690_v41 = vld [vmem:[#allocation19_spill] sm:$0xff] }
 0x2fd   :  { %v907_v52 = vmul.f32 %v1715_v53, %v906_v43  ;;  %v920_v42 = vmul.f32 %v902_v50, %v3056_v34  ;;  %v3691_v50 = vld [vmem:[#allocation6_spill] sm:$0xff] }
 0x2ff   :  { %v922_v51 = vadd.f32 %v921_v59, %v920_v42  ;;  %v908_v44 = vadd.f32 %v1715_v53, %v907_v52  ;;  %v3692_v42 = vld [vmem:[#allocation27_spill] sm:$0xff] }
 0x301   :  { %1718 = vtanh.f32 %v922_v51  ;;  %v928_v39 = vsub.f32 %v922_v51, %v3056_v34  ;;  %v912_v38 = vsel %vm911_vm15, %v1715_v53, %v908_v44  ;;  %v3684_v53 = vld [vmem:[#allocation7_spill] sm:$0xff]  ;;  %v3693_v51 = vld [vmem:[#allocation13_spill] sm:$0xff]  ;;  %v3694_v44 = vld [vmem:[#allocation18_spill] sm:$0xff] }
 0x302   :  { %v917_v59 = vsel %vm914_vm0, %v916_v31, %v912_v38  ;;  %v3700_v38 = vld [vmem:[#allocation23_spill] sm:$0xff]  ;;  %v3701_v31 = vld [vmem:[#allocation25_spill] sm:$0xff] }
 0x303   :  { %v929_v36 = vmul.f32 %v928_v39, %v316_v40  ;;  %v3697_v39 = vld [vmem:[#allocation8_spill] sm:$0xff] }
 0x305   :  { %v3175_v43 = vadd.f32 %v929_v36, %v3056_v34  ;;  %v3682_v34 = vld [vmem:[#allocation12_spill] sm:$0xff]  ;;  %v3699_v36 = vld [vmem:[#allocation21_spill] sm:$0xff] }
 0x307   :  { %v1719_v52 = vpop.eup %1718 }
 0x308   :  { %v924_v56 = vmul.f32 %v1719_v52, %v917_v59  ;;  %v3702_v52 = vld [vmem:[#allocation11_spill] sm:$0xff]  ;;  %v3703_v59 = vld [vmem:[#allocation26_spill] sm:$0xff] }
 0x30a   :  { %v925_v47 = vsub.f32 %v924_v56, %v3060_v49  ;;  %v3704_v56 = vld [vmem:[#allocation28_spill] sm:$0xff] }
 0x30c   :  { %v926_v55 = vmul.f32 %v925_v47, %v316_v40  ;;  %v3695_v40 = vld [vmem:[#allocation22_spill] sm:$0xff]  ;;  %v3705_v47 = vld [vmem:[#allocation20_spill] sm:$0xff] }
 0x30e   :  { %v3179_v32 = vadd.f32 %v926_v55, %v3060_v49  ;;  %v3683_v49 = vld [vmem:[#allocation4_spill] sm:$0xff] }
 0x30f   :  { %v3706_v55 = vld [vmem:[#allocation24_spill] sm:$0xff] }
 0x310   :  { %947 = vmatmul.f32.vlgmr.msrb.gmra.mxu0 %v3179_v32  ;;  %967 = vmatmul.f32.vlgmr.msra.gmra.mxu1 %v3179_v32 }
 0x311   :  { %987 = vmatmul.f32.vlgmr.msra.gmra.mxu2 %v3179_v32  ;;  %1007 = vmatmul.f32.vlgmr.msra.gmra.mxu3 %v3179_v32 }
 0x312   :  { %1237 = vmatpush.msrb.mxu0 %v2700_v2  ;;  %1257 = vmatpush.msra.mxu1 %v2706_v63 }
 0x313   :  { %1277 = vmatpush.msra.mxu2 %v2712_v60  ;;  %1297 = vmatpush.msra.mxu3 %v2718_v62 }
 0x314   :  { %1238 = vmatpush.msrb.mxu0 %v2724_v1  ;;  %1258 = vmatpush.msra.mxu1 %v2730_v3 }
 0x315   :  { %1278 = vmatpush.msra.mxu2 %v2736_v10  ;;  %1298 = vmatpush.msra.mxu3 %v2742_v7 }
 0x316   :  { %1239 = vmatpush.msrb.mxu0 %v2748_v5  ;;  %1259 = vmatpush.msra.mxu1 %v2754_v4 }
 0x317   :  { %1279 = vmatpush.msra.mxu2 %v2760_v20  ;;  %1299 = vmatpush.msra.mxu3 %v2766_v21 }
 0x318   :  { %1240 = vmatpush.msrb.mxu0 %v2772_v18  ;;  %1260 = vmatpush.msra.mxu1 %v2778_v11 }
 0x319   :  { %1280 = vmatpush.msra.mxu2 %v2784_v35  ;;  %1300 = vmatpush.msra.mxu3 %v2790_v6 }
 0x31a   :  { %1241 = vmatpush.msrb.mxu0 %v2796_v17  ;;  %1261 = vmatpush.msra.mxu1 %v2802_v15 }
 0x31b   :  { %1281 = vmatpush.msra.mxu2 %v2808_v13  ;;  %1301 = vmatpush.msra.mxu3 %v2814_v61 }
 0x31c   :  { %1242 = vmatpush.msrb.mxu0 %v2820_v23  ;;  %1262 = vmatpush.msra.mxu1 %v2826_v14 }
 0x31d   :  { %1282 = vmatpush.msra.mxu2 %v2832_v9  ;;  %1302 = vmatpush.msra.mxu3 %v2838_v48 }
 0x31e   :  { %1243 = vmatpush.msrb.mxu0 %v2844_v16  ;;  %1263 = vmatpush.msra.mxu1 %v2850_v12 }
 0x31f   :  { %1283 = vmatpush.msra.mxu2 %v2856_v8  ;;  %1303 = vmatpush.msra.mxu3 %v2862_v0 }
 0x320   :  { %1244 = vmatpush.msrb.mxu0 %v2868_v57  ;;  %1264 = vmatpush.msra.mxu1 %v2874_v22 }
 0x321   :  { %1284 = vmatpush.msra.mxu2 %v2880_v19  ;;  %1304 = vmatpush.msra.mxu3 %v2886_v24 }
 0x322   :  { %1245 = vmatpush.msrb.mxu0 %v2892_v25  ;;  %1265 = vmatpush.msra.mxu1 %v2898_v26 }
 0x323   :  { %1285 = vmatpush.msra.mxu2 %v2904_v27  ;;  %1305 = vmatpush.msra.mxu3 %v2910_v28 }
 0x324   :  { %1246 = vmatpush.msrb.mxu0 %v2916_v29  ;;  %1266 = vmatpush.msra.mxu1 %v3682_v34 }
 0x325   :  { %1286 = vmatpush.msra.mxu2 %v3683_v49  ;;  %1306 = vmatpush.msra.mxu3 %v3684_v53 }
 0x326   :  { %1247 = vmatpush.msrb.mxu0 %v3685_v33  ;;  %1267 = vmatpush.msra.mxu1 %v3686_v37 }
 0x327   :  { %1287 = vmatpush.msra.mxu2 %v3687_v46  ;;  %1307 = vmatpush.msra.mxu3 %v3688_v58 }
 0x328   :  { %1248 = vmatpush.msrb.mxu0 %v3689_v54  ;;  %1268 = vmatpush.msra.mxu1 %v3690_v41 }
 0x329   :  { %1288 = vmatpush.msra.mxu2 %v3691_v50  ;;  %1308 = vmatpush.msra.mxu3 %v3692_v42 }
 0x32a   :  { %1249 = vmatpush.msrb.mxu0 %v3693_v51  ;;  %1269 = vmatpush.msra.mxu1 %v3694_v44  ;;  %v3710_v44 = vld [vmem:[#allocation43_spill] sm:$0xff] }
 0x32b   :  { %1289 = vmatpush.msra.mxu2 %v3695_v40  ;;  %1309 = vmatpush.msra.mxu3 %v3696_v30  ;;  %v3707_v30 = vld [vmem:[#allocation30_spill] sm:$0xff]  ;;  %v3709_v40 = vld [vmem:[#allocation39_spill] sm:$0xff] }
 0x32c   :  { %1250 = vmatpush.msrb.mxu0 %v3697_v39  ;;  %1270 = vmatpush.msra.mxu1 %v3698_v45  ;;  %v3708_v39 = vld [vmem:[#allocation32_spill] sm:$0xff] }
 0x32d   :  { %1290 = vmatpush.msra.mxu2 %v3699_v36  ;;  %1310 = vmatpush.msra.mxu3 %v3700_v38 }
 0x32e   :  { %1251 = vmatpush.msrb.mxu0 %v3701_v31  ;;  %1271 = vmatpush.msra.mxu1 %v3702_v52 }
 0x32f   :  { %1291 = vmatpush.msra.mxu2 %v3703_v59  ;;  %1311 = vmatpush.msra.mxu3 %v3704_v56  ;;  %v3711_v56 = vld [vmem:[#allocation44_spill] sm:$0xff] }
 0x330   :  { %1252 = vmatpush.msrb.mxu0 %v3705_v47  ;;  %1272 = vmatpush.msra.mxu1 %v3706_v55 }
 0x331   :  { %1292 = vmatpush.msra.mxu2 %v3707_v30  ;;  %1312 = vmatpush.msra.mxu3 %v3708_v39 }
 0x38d   :  { %v948_v45 = vpop.f32.mrf.mxu0  ;;  %v968_v36 = vpop.f32.mrf.mxu1 }
 0x38e   :  { %v1011_v38 = vadd.f32 %v948_v45, %v3709_v40  ;;  %v1012_v31 = vadd.f32 %v968_v36, %v3710_v44  ;;  %v3712_v44 = vld [vmem:[#allocation45_spill] sm:$0xff] }
 0x390   :  { %v1630_v51 = vmul.f32 -1.442695, %v1011_v38  ;;  %v1631_v52 = vmul.f32 -1.442695, %v1012_v31 }
 0x392   :  { %1720 = vpow2.f32 %v1630_v51 }
 0x393   :  { %1722 = vpow2.f32 %v1631_v52 }
 0x394   :  { %v988_v59 = vpop.f32.mrf.mxu2  ;;  %v1008_v39 = vpop.f32.mrf.mxu3 }
 0x395   :  { %v1013_v42 = vadd.f32 %v988_v59, %v3711_v56  ;;  %v1014_v36 = vadd.f32 %v1008_v39, %v3712_v44 }
 0x397   :  { %v1632_v47 = vmul.f32 -1.442695, %v1013_v42 }
 0x398   :  { %v1721_v50 = vpop.eup %1720 }
 0x399   :  { %v1723_v55 = vpop.eup %1722  ;;  %v1024_v41 = vadd.f32 1.0, %v1721_v50  ;;  %1724 = vpow2.f32 %v1632_v47 }
 0x39a   :  { %v1025_v30 = vadd.f32 1.0, %v1723_v55 }
 0x39b   :  { %1726 = vrcp.f32 %v1024_v41  ;;  %v1038_v42 = vand.u32 2147483648, %v1024_v41  ;;  %v1036_v47 = vand.u32 2147483647, %v1024_v41  ;;  %vm1032_vm3 = vweird.f32 %v1024_v41 }
 0x39c   :  { %1728 = vrcp.f32 %v1025_v30  ;;  %v1053_v56 = vand.u32 2147483648, %v1025_v30  ;;  %v1051_v58 = vand.u32 2147483647, %v1025_v30  ;;  %vm1047_vm4 = vweird.f32 %v1025_v30 }
 0x39d   :  { %v1039_v44 = vor.u32 1.1754944e-38, %v1038_v42  ;;  %vm1037_vm7 = vcmp.eq.f32.partialorder %v1036_v47, 8.507059e+37  ;;  %v317_v42 = vld [vmem:[%s3441_s1 + $0x20] sm:$0xff] }
 0x39e   :  { %vm1052_vm8 = vcmp.eq.f32.partialorder %v1051_v58, 8.507059e+37 }
 0x39f   :  { %v1725_v54 = vpop.eup %1724 }
 0x3a0   :  { %v1026_v40 = vadd.f32 1.0, %v1725_v54 }
 0x3a1   :  { %v1727_v45 = vpop.eup %1726 }
 0x3a2   :  { %v1729_v38 = vpop.eup %1728  ;;  %v1028_v51 = vmul.f32 %v1727_v45, %v1024_v41  ;;  %1730 = vrcp.f32 %v1026_v40  ;;  %vm1033_vm1 = vweird.f32 %v1727_v45  ;;  %vm1062_vm10 = vweird.f32 %v1026_v40 }
 0x3a3   :  { %v1043_v31 = vmul.f32 %v1729_v38, %v1025_v30  ;;  %1732 = vtanh.f32 %v1014_v36  ;;  %vm1048_vm2 = vweird.f32 %v1729_v38  ;;  %vm1034_vm5 = vmor %vm1032_vm3, %vm1033_vm1  ;;  %v1066_v47 = vand.u32 2147483647, %v1026_v40 }
 0x3a4   :  { %v1029_v52 = vsub.f32 1.0, %v1028_v51  ;;  %vm1049_vm6 = vmor %vm1047_vm4, %vm1048_vm2  ;;  %v1054_v51 = vor.u32 1.1754944e-38, %v1053_v56  ;;  %v1068_v56 = vand.u32 2147483648, %v1026_v40 }
 0x3a5   :  { %v1044_v59 = vsub.f32 1.0, %v1043_v31  ;;  %vm1067_vm12 = vcmp.eq.f32.partialorder %v1066_v47, 8.507059e+37 }
 0x3a6   :  { %v1030_v50 = vmul.f32 %v1727_v45, %v1029_v52  ;;  %v1069_v58 = vor.u32 1.1754944e-38, %v1068_v56 }
 0x3a7   :  { %v1045_v55 = vmul.f32 %v1729_v38, %v1044_v59 }
 0x3a8   :  { %v1731_v46 = vpop.eup %1730  ;;  %v1031_v54 = vadd.f32 %v1727_v45, %v1030_v50 }
 0x3a9   :  { %v1058_v39 = vmul.f32 %v1731_v46, %v1026_v40  ;;  %v1046_v37 = vadd.f32 %v1729_v38, %v1045_v55  ;;  %v1733_v36 = vpop.eup %1732  ;;  %vm1063_vm9 = vweird.f32 %v1731_v46 }
 0x3aa   :  { %v1035_v31 = vsel %vm1034_vm5, %v1727_v45, %v1031_v54  ;;  %vm1064_vm11 = vmor %vm1062_vm10, %vm1063_vm9 }
 0x3ab   :  { %v1059_v33 = vsub.f32 1.0, %v1058_v39  ;;  %v1040_v52 = vsel %vm1037_vm7, %v1039_v44, %v1035_v31  ;;  %v1050_v53 = vsel %vm1049_vm6, %v1729_v38, %v1046_v37 }
 0x3ac   :  { %v1055_v59 = vsel %vm1052_vm8, %v1054_v51, %v1050_v53  ;;  %v1074_v49 = vmul.f32 %v1733_v36, %v1040_v52 }
 0x3ad   :  { %v1060_v34 = vmul.f32 %v1731_v46, %v1059_v33  ;;  %v1073_v50 = vmul.f32 %v1055_v59, %v3175_v43 }
 0x3af   :  { %v1075_v41 = vadd.f32 %v1074_v49, %v1073_v50  ;;  %v1061_v30 = vadd.f32 %v1731_v46, %v1060_v34  ;;  %v3743_v50 = vld [vmem:[#allocation48_spill] sm:$0xff] }
 0x3b1   :  { %1734 = vtanh.f32 %v1075_v41  ;;  %v1081_v45 = vsub.f32 %v1075_v41, %v3175_v43  ;;  %v1065_v53 = vsel %vm1064_vm11, %v1731_v46, %v1061_v30 }
 0x3b2   :  { %v1070_v49 = vsel %vm1067_vm12, %v1069_v58, %v1065_v53 }
 0x3b3   :  { %v1082_v37 = vmul.f32 %v1081_v45, %v317_v42 }
 0x3b5   :  { %v3259_v33 = vadd.f32 %v1082_v37, %v3175_v43 }
 0x3b7   :  { %v1735_v34 = vpop.eup %1734 }
 0x3b8   :  { %v1077_v38 = vmul.f32 %v1735_v34, %v1070_v49 }
 0x3ba   :  { %v1078_v55 = vsub.f32 %v1077_v38, %v3179_v32 }
 0x3bc   :  { %v1079_v54 = vmul.f32 %v1078_v55, %v317_v42 }
 0x3be   :  { %v3263_v39 = vadd.f32 %v1079_v54, %v3179_v32 }
 0x3c0   :  { %1100 = vmatmul.f32.vlgmr.msra.gmra.mxu0 %v3263_v39  ;;  %1120 = vmatmul.f32.vlgmr.msrb.gmra.mxu1 %v3263_v39 }
 0x3c1   :  { %1140 = vmatmul.f32.vlgmr.msrb.gmra.mxu2 %v3263_v39  ;;  %1160 = vmatmul.f32.vlgmr.msrb.gmra.mxu3 %v3263_v39 }
 0x3c2   :  { %1390 = vmatpush.msra.mxu0 %v2700_v2  ;;  %1410 = vmatpush.msrb.mxu1 %v2706_v63  ;;  %v3713_v2 = vld [vmem:[#allocation12_spill] sm:$0xff] }
 0x3c3   :  { %1430 = vmatpush.msrb.mxu2 %v2712_v60  ;;  %1450 = vmatpush.msrb.mxu3 %v2718_v62  ;;  %v3714_v63 = vld [vmem:[#allocation4_spill] sm:$0xff]  ;;  %v3715_v60 = vld [vmem:[#allocation7_spill] sm:$0xff]  ;;  %v3716_v62 = vld [vmem:[#allocation10_spill] sm:$0xff] }
 0x3c4   :  { %1391 = vmatpush.msra.mxu0 %v2724_v1  ;;  %1411 = vmatpush.msrb.mxu1 %v2730_v3  ;;  %v3717_v1 = vld [vmem:[#allocation16_spill] sm:$0xff]  ;;  %v3718_v3 = vld [vmem:[#allocation5_spill] sm:$0xff] }
 0x3c5   :  { %1431 = vmatpush.msrb.mxu2 %v2736_v10  ;;  %1451 = vmatpush.msrb.mxu3 %v2742_v7  ;;  %v3719_v10 = vld [vmem:[#allocation9_spill] sm:$0xff]  ;;  %v3720_v7 = vld [vmem:[#allocation14_spill] sm:$0xff] }
 0x3c6   :  { %1392 = vmatpush.msra.mxu0 %v2748_v5  ;;  %1412 = vmatpush.msrb.mxu1 %v2754_v4  ;;  %v3721_v5 = vld [vmem:[#allocation19_spill] sm:$0xff]  ;;  %v3722_v4 = vld [vmem:[#allocation6_spill] sm:$0xff] }
 0x3c7   :  { %1432 = vmatpush.msrb.mxu2 %v2760_v20  ;;  %1452 = vmatpush.msrb.mxu3 %v2766_v21  ;;  %v3723_v20 = vld [vmem:[#allocation27_spill] sm:$0xff]  ;;  %v3724_v21 = vld [vmem:[#allocation13_spill] sm:$0xff] }
 0x3c8   :  { %1393 = vmatpush.msra.mxu0 %v2772_v18  ;;  %1413 = vmatpush.msrb.mxu1 %v2778_v11  ;;  %v3725_v18 = vld [vmem:[#allocation18_spill] sm:$0xff] }
 0x3c9   :  { %1433 = vmatpush.msrb.mxu2 %v2784_v35  ;;  %1453 = vmatpush.msrb.mxu3 %v2790_v6  ;;  %v3726_v11 = vld [vmem:[#allocation22_spill] sm:$0xff]  ;;  %v3727_v35 = vld [vmem:[#allocation15_spill] sm:$0xff]  ;;  %v3728_v6 = vld [vmem:[#allocation8_spill] sm:$0xff] }
 0x3ca   :  { %1394 = vmatpush.msra.mxu0 %v2796_v17  ;;  %1414 = vmatpush.msrb.mxu1 %v2802_v15  ;;  %v3729_v17 = vld [vmem:[#allocation17_spill] sm:$0xff] }
 0x3cb   :  { %1434 = vmatpush.msrb.mxu2 %v2808_v13  ;;  %1454 = vmatpush.msrb.mxu3 %v2814_v61  ;;  %v3730_v15 = vld [vmem:[#allocation21_spill] sm:$0xff]  ;;  %v3731_v13 = vld [vmem:[#allocation23_spill] sm:$0xff] }
 0x3cc   :  { %1395 = vmatpush.msra.mxu0 %v2820_v23  ;;  %1415 = vmatpush.msrb.mxu1 %v2826_v14  ;;  %v3732_v61 = vld [vmem:[#allocation25_spill] sm:$0xff]  ;;  %v3733_v23 = vld [vmem:[#allocation11_spill] sm:$0xff]  ;;  %v3734_v14 = vld [vmem:[#allocation26_spill] sm:$0xff] }
 0x3cd   :  { %1435 = vmatpush.msrb.mxu2 %v2832_v9  ;;  %1455 = vmatpush.msrb.mxu3 %v2838_v48  ;;  %v3735_v9 = vld [vmem:[#allocation28_spill] sm:$0xff] }
 0x3ce   :  { %1396 = vmatpush.msra.mxu0 %v2844_v16  ;;  %1416 = vmatpush.msrb.mxu1 %v2850_v12  ;;  %v3736_v48 = vld [vmem:[#allocation20_spill] sm:$0xff]  ;;  %v3738_v12 = vld [vmem:[#allocation30_spill] sm:$0xff] }
 0x3cf   :  { %1436 = vmatpush.msrb.mxu2 %v2856_v8  ;;  %1456 = vmatpush.msrb.mxu3 %v2862_v0  ;;  %v3737_v16 = vld [vmem:[#allocation24_spill] sm:$0xff] }
 0x3d0   :  { %1397 = vmatpush.msra.mxu0 %v2868_v57  ;;  %1417 = vmatpush.msrb.mxu1 %v2874_v22  ;;  %v3739_v8 = vld [vmem:[#allocation32_spill] sm:$0xff]  ;;  %v3740_v22 = vld [vmem:[#allocation2_spill] sm:$0xff] }
 0x3d1   :  { %1437 = vmatpush.msrb.mxu2 %v2880_v19  ;;  %1457 = vmatpush.msrb.mxu3 %v2886_v24  ;;  %v3741_v24 = vld [vmem:[#allocation46_spill] sm:$0xff] }
 0x3d2   :  { %1398 = vmatpush.msra.mxu0 %v2892_v25  ;;  %1418 = vmatpush.msrb.mxu1 %v2898_v26 }
 0x3d3   :  { %1438 = vmatpush.msrb.mxu2 %v2904_v27  ;;  %1458 = vmatpush.msrb.mxu3 %v2910_v28 }
 0x3d4   :  { %1399 = vmatpush.msra.mxu0 %v2916_v29  ;;  %1419 = vmatpush.msrb.mxu1 %v3713_v2  ;;  %v3742_v29 = vld [vmem:[#allocation47_spill] sm:$0xff] }
 0x3d5   :  { %1439 = vmatpush.msrb.mxu2 %v3714_v63  ;;  %1459 = vmatpush.msrb.mxu3 %v3715_v60 }
 0x3d6   :  { %1400 = vmatpush.msra.mxu0 %v3716_v62  ;;  %1420 = vmatpush.msrb.mxu1 %v3717_v1 }
 0x3d7   :  { %1440 = vmatpush.msrb.mxu2 %v3718_v3  ;;  %1460 = vmatpush.msrb.mxu3 %v3719_v10 }
 0x3d8   :  { %1401 = vmatpush.msra.mxu0 %v3720_v7  ;;  %1421 = vmatpush.msrb.mxu1 %v3721_v5 }
 0x3d9   :  { %1441 = vmatpush.msrb.mxu2 %v3722_v4  ;;  %1461 = vmatpush.msrb.mxu3 %v3723_v20 }
 0x3da   :  { %1402 = vmatpush.msra.mxu0 %v3724_v21  ;;  %1422 = vmatpush.msrb.mxu1 %v3725_v18 }
 0x3db   :  { %1442 = vmatpush.msrb.mxu2 %v3726_v11  ;;  %1462 = vmatpush.msrb.mxu3 %v3727_v35 }
 0x3dc   :  { %1403 = vmatpush.msra.mxu0 %v3728_v6  ;;  %1423 = vmatpush.msrb.mxu1 %v3729_v17  ;;  %v318_v6 = vld [vmem:[%s3441_s1 + $0x28] sm:$0xff] }
 0x3dd   :  { %1443 = vmatpush.msrb.mxu2 %v3730_v15  ;;  %1463 = vmatpush.msrb.mxu3 %v3731_v13 }
 0x3de   :  { %1404 = vmatpush.msra.mxu0 %v3732_v61  ;;  %1424 = vmatpush.msrb.mxu1 %v3733_v23 }
 0x3df   :  { %1444 = vmatpush.msrb.mxu2 %v3734_v14  ;;  %1464 = vmatpush.msrb.mxu3 %v3735_v9 }
 0x3e0   :  { %1405 = vmatpush.msra.mxu0 %v3736_v48  ;;  %1425 = vmatpush.msrb.mxu1 %v3737_v16 }
 0x3e1   :  { %1445 = vmatpush.msrb.mxu2 %v3738_v12  ;;  %1465 = vmatpush.msrb.mxu3 %v3739_v8 }
 0x43d   :  { %v1101_v0 = vpop.f32.mrf.mxu0  ;;  %v1121_v57 = vpop.f32.mrf.mxu1 }
 0x43e   :  { %v1164_v19 = vadd.f32 %v1101_v0, %v3740_v22  ;;  %v1165_v25 = vadd.f32 %v1121_v57, %v3741_v24 }
 0x440   :  { %v1633_v26 = vmul.f32 -1.442695, %v1164_v19  ;;  %v1634_v27 = vmul.f32 -1.442695, %v1165_v25  ;;  %v3744_v19 = vld [vmem:[#allocation3_spill] sm:$0xff]  ;;  %v3745_v25 = vld [vmem:[#allocation49_spill] sm:$0xff] }
 0x442   :  { %1736 = vpow2.f32 %v1633_v26 }
 0x443   :  { %1738 = vpow2.f32 %v1634_v27 }
 0x444   :  { %v1141_v28 = vpop.f32.mrf.mxu2  ;;  %v1161_v31 = vpop.f32.mrf.mxu3 }
 0x445   :  { %v1166_v43 = vadd.f32 %v1141_v28, %v3742_v29  ;;  %v1167_v41 = vadd.f32 %v1161_v31, %v3743_v50  ;;  %v3746_v29 = vld [vmem:[#allocation50_spill] sm:$0xff]  ;;  %v3747_v50 = vld [vmem:[#allocation51_spill] sm:$0xff] }
 0x447   :  { %v1635_v32 = vmul.f32 -1.442695, %v1166_v43 }
 0x448   :  { %v1737_v46 = vpop.eup %1736 }
 0x449   :  { %v1739_v40 = vpop.eup %1738  ;;  %v1177_v44 = vadd.f32 1.0, %v1737_v46  ;;  %1740 = vpow2.f32 %v1635_v32 }
 0x44a   :  { %v1178_v51 = vadd.f32 1.0, %v1739_v40 }
 0x44b   :  { %1742 = vrcp.f32 %v1177_v44  ;;  %v1191_v37 = vand.u32 2147483648, %v1177_v44  ;;  %v1189_v34 = vand.u32 2147483647, %v1177_v44  ;;  %vm1185_vm15 = vweird.f32 %v1177_v44 }
 0x44c   :  { %1744 = vrcp.f32 %v1178_v51  ;;  %v1206_v53 = vand.u32 2147483648, %v1178_v51  ;;  %v1204_v38 = vand.u32 2147483647, %v1178_v51  ;;  %vm1200_vm0 = vweird.f32 %v1178_v51 }
 0x44d   :  { %v1192_v63 = vor.u32 1.1754944e-38, %v1191_v37  ;;  %vm1190_vm3 = vcmp.eq.f32.partialorder %v1189_v34, 8.507059e+37 }
 0x44e   :  { %v1207_v62 = vor.u32 1.1754944e-38, %v1206_v53  ;;  %vm1205_vm4 = vcmp.eq.f32.partialorder %v1204_v38, 8.507059e+37 }
 0x44f   :  { %v1741_v36 = vpop.eup %1740 }
 0x450   :  { %v1179_v52 = vadd.f32 1.0, %v1741_v36 }
 0x451   :  { %v1743_v59 = vpop.eup %1742 }
 0x452   :  { %v1745_v30 = vpop.eup %1744  ;;  %v1181_v42 = vmul.f32 %v1743_v59, %v1177_v44  ;;  %1746 = vrcp.f32 %v1179_v52  ;;  %vm1186_vm13 = vweird.f32 %v1743_v59  ;;  %v1221_v17 = vand.u32 2147483648, %v1179_v52 }
 0x453   :  { %v1196_v56 = vmul.f32 %v1745_v30, %v1178_v51  ;;  %1748 = vtanh.f32 %v1167_v41  ;;  %vm1201_vm14 = vweird.f32 %v1745_v30  ;;  %vm1187_vm1 = vmor %vm1185_vm15, %vm1186_vm13  ;;  %vm1215_vm6 = vweird.f32 %v1179_v52 }
 0x454   :  { %v1182_v45 = vsub.f32 1.0, %v1181_v42  ;;  %vm1202_vm2 = vmor %vm1200_vm0, %vm1201_vm14  ;;  %v1219_v13 = vand.u32 2147483647, %v1179_v52  ;;  %v1222_v14 = vor.u32 1.1754944e-38, %v1221_v17 }
 0x455   :  { %v1197_v47 = vsub.f32 1.0, %v1196_v56 }
 0x456   :  { %v1183_v58 = vmul.f32 %v1743_v59, %v1182_v45  ;;  %vm1220_vm8 = vcmp.eq.f32.partialorder %v1219_v13, 8.507059e+37 }
 0x457   :  { %v1198_v49 = vmul.f32 %v1745_v30, %v1197_v47 }
 0x458   :  { %v1747_v55 = vpop.eup %1746  ;;  %v1184_v54 = vadd.f32 %v1743_v59, %v1183_v58 }
 0x459   :  { %v1211_v2 = vmul.f32 %v1747_v55, %v1179_v52  ;;  %v1199_v60 = vadd.f32 %v1745_v30, %v1198_v49  ;;  %v1749_v3 = vpop.eup %1748  ;;  %vm1216_vm5 = vweird.f32 %v1747_v55 }
 0x45a   :  { %v1188_v1 = vsel %vm1187_vm1, %v1743_v59, %v1184_v54  ;;  %vm1217_vm7 = vmor %vm1215_vm6, %vm1216_vm5 }
 0x45b   :  { %v1212_v10 = vsub.f32 1.0, %v1211_v2  ;;  %v1193_v7 = vsel %vm1190_vm3, %v1192_v63, %v1188_v1  ;;  %v1203_v5 = vsel %vm1202_vm2, %v1745_v30, %v1199_v60 }
 0x45c   :  { %v1208_v4 = vsel %vm1205_vm4, %v1207_v62, %v1203_v5  ;;  %v1227_v20 = vmul.f32 %v1749_v3, %v1193_v7 }
 0x45d   :  { %v1213_v21 = vmul.f32 %v1747_v55, %v1212_v10  ;;  %v1226_v18 = vmul.f32 %v1208_v4, %v3259_v33 }
 0x45f   :  { %v1228_v11 = vadd.f32 %v1227_v20, %v1226_v18  ;;  %v1214_v35 = vadd.f32 %v1747_v55, %v1213_v21 }
 0x461   :  { %1750 = vtanh.f32 %v1228_v11  ;;  %v1234_v15 = vsub.f32 %v1228_v11, %v3259_v33  ;;  %v1218_v23 = vsel %vm1217_vm7, %v1747_v55, %v1214_v35 }
 0x462   :  { %v1223_v16 = vsel %vm1220_vm8, %v1222_v14, %v1218_v23 }
 0x463   :  { %v1235_v61 = vmul.f32 %v1234_v15, %v318_v6 }
 0x465   :  { %v3343_v9 = vadd.f32 %v1235_v61, %v3259_v33 }
 0x467   :  { %v1751_v48 = vpop.eup %1750 }
 0x468   :  { %v1230_v12 = vmul.f32 %v1751_v48, %v1223_v16 }
 0x46a   :  { %v1231_v8 = vsub.f32 %v1230_v12, %v3263_v39 }
 0x46c   :  { %v1232_v0 = vmul.f32 %v1231_v8, %v318_v6  ;;  %v319_v6 = vld [vmem:[%s3441_s1 + $0x30] sm:$0xff] }
 0x46e   :  { %v3347_v57 = vadd.f32 %v1232_v0, %v3263_v39 }
 0x470   :  { %1253 = vmatmul.f32.vlgmr.msrb.gmra.mxu0 %v3347_v57  ;;  %1273 = vmatmul.f32.vlgmr.msra.gmra.mxu1 %v3347_v57 }
 0x471   :  { %1293 = vmatmul.f32.vlgmr.msra.gmra.mxu2 %v3347_v57  ;;  %1313 = vmatmul.f32.vlgmr.msra.gmra.mxu3 %v3347_v57 }
 0x4ed   :  { %v1254_v33 = vpop.f32.mrf.mxu0  ;;  %v1274_v22 = vpop.f32.mrf.mxu1 }
 0x4ee   :  { %v1317_v24 = vadd.f32 %v1254_v33, %v3744_v19  ;;  %v1318_v26 = vadd.f32 %v1274_v22, %v3745_v25  ;;  %v1555_v19 = vld [vmem:[%s3443_s5 + $0x70] sm:$0xff]  ;;  %v1552_v25 = vld [vmem:[%s3443_s5 + $0x58] sm:$0xff] }
 0x4f0   :  { %v1636_v27 = vmul.f32 -1.442695, %v1317_v24  ;;  %v1637_v28 = vmul.f32 -1.442695, %v1318_v26  ;;  %v1553_v24 = vld [vmem:[%s3443_s5 + $0x60] sm:$0xff] }
 0x4f2   :  { %1752 = vpow2.f32 %v1636_v27 }
 0x4f3   :  { %1754 = vpow2.f32 %v1637_v28  ;;  %v1551_v28 = vld [vmem:[%s3443_s5 + $0x50] sm:$0xff] }
 0x4f4   :  { %v1294_v39 = vpop.f32.mrf.mxu2  ;;  %v1314_v31 = vpop.f32.mrf.mxu3 }
 0x4f5   :  { %v1319_v43 = vadd.f32 %v1294_v39, %v3746_v29  ;;  %v1320_v41 = vadd.f32 %v1314_v31, %v3747_v50  ;;  %v3748_v39 = vld [vmem:[#allocation29_spill] sm:$0xff] }
 0x4f6   :  { %v1548_v31 = vld [vmem:[%s3443_s5 + $0x38] sm:$0xff] }
 0x4f7   :  { %v1638_v32 = vmul.f32 -1.442695, %v1319_v43  ;;  %v3749_v43 = vld [vmem:[#allocation52_spill] sm:$0xff] }
 0x4f8   :  { %v1753_v46 = vpop.eup %1752 }
 0x4f9   :  { %v1755_v40 = vpop.eup %1754  ;;  %v1330_v44 = vadd.f32 1.0, %v1753_v46  ;;  %1756 = vpow2.f32 %v1638_v32  ;;  %v1550_v46 = vld [vmem:[%s3443_s5 + $0x48] sm:$0xff] }
 0x4fa   :  { %v1331_v51 = vadd.f32 1.0, %v1755_v40 }
 0x4fb   :  { %1758 = vrcp.f32 %v1330_v44  ;;  %v1344_v37 = vand.u32 2147483648, %v1330_v44  ;;  %v1342_v34 = vand.u32 2147483647, %v1330_v44  ;;  %vm1338_vm11 = vweird.f32 %v1330_v44 }
 0x4fc   :  { %1760 = vrcp.f32 %v1331_v51  ;;  %v1359_v53 = vand.u32 2147483648, %v1331_v51  ;;  %v1357_v38 = vand.u32 2147483647, %v1331_v51  ;;  %vm1353_vm12 = vweird.f32 %v1331_v51 }
 0x4fd   :  { %v1345_v63 = vor.u32 1.1754944e-38, %v1344_v37  ;;  %vm1343_vm15 = vcmp.eq.f32.partialorder %v1342_v34, 8.507059e+37  ;;  %v1544_v37 = vld [vmem:[%s3443_s5 + $0x18] sm:$0xff]  ;;  %v1542_v34 = vld [vmem:[%s3443_s5 + $0x8] sm:$0xff] }
 0x4fe   :  { %v1360_v62 = vor.u32 1.1754944e-38, %v1359_v53  ;;  %vm1358_vm0 = vcmp.eq.f32.partialorder %v1357_v38, 8.507059e+37 }
 0x4ff   :  { %v1757_v36 = vpop.eup %1756 }
 0x500   :  { %v1332_v52 = vadd.f32 1.0, %v1757_v36  ;;  %v1547_v36 = vld [vmem:[%s3443_s5 + $0x30] sm:$0xff] }
 0x501   :  { %v1759_v59 = vpop.eup %1758 }
 0x502   :  { %v1761_v30 = vpop.eup %1760  ;;  %v1334_v42 = vmul.f32 %v1759_v59, %v1330_v44  ;;  %1762 = vrcp.f32 %v1332_v52  ;;  %vm1339_vm9 = vweird.f32 %v1759_v59  ;;  %v1374_v17 = vand.u32 2147483648, %v1332_v52 }
 0x503   :  { %v1349_v56 = vmul.f32 %v1761_v30, %v1331_v51  ;;  %1764 = vtanh.f32 %v1320_v41  ;;  %vm1354_vm10 = vweird.f32 %v1761_v30  ;;  %vm1340_vm13 = vmor %vm1338_vm11, %vm1339_vm9  ;;  %vm1368_vm2 = vweird.f32 %v1332_v52  ;;  %v1549_v51 = vld [vmem:[%s3443_s5 + $0x40] sm:$0xff]  ;;  %v1546_v41 = vld [vmem:[%s3443_s5 + $0x28] sm:$0xff] }
 0x504   :  { %v1335_v45 = vsub.f32 1.0, %v1334_v42  ;;  %vm1355_vm14 = vmor %vm1353_vm12, %vm1354_vm10  ;;  %v1372_v13 = vand.u32 2147483647, %v1332_v52  ;;  %v1375_v14 = vor.u32 1.1754944e-38, %v1374_v17  ;;  %v1545_v42 = vld [vmem:[%s3443_s5 + $0x20] sm:$0xff] }
 0x505   :  { %v1350_v47 = vsub.f32 1.0, %v1349_v56 }
 0x506   :  { %v1336_v58 = vmul.f32 %v1759_v59, %v1335_v45  ;;  %vm1373_vm4 = vcmp.eq.f32.partialorder %v1372_v13, 8.507059e+37 }
 0x507   :  { %v1351_v49 = vmul.f32 %v1761_v30, %v1350_v47 }
 0x508   :  { %v1763_v55 = vpop.eup %1762  ;;  %v1337_v54 = vadd.f32 %v1759_v59, %v1336_v58  ;;  %v1543_v58 = vld [vmem:[%s3443_s5 + $0x10] sm:$0xff] }
 0x509   :  { %v1364_v2 = vmul.f32 %v1763_v55, %v1332_v52  ;;  %v1352_v60 = vadd.f32 %v1761_v30, %v1351_v49  ;;  %v1765_v3 = vpop.eup %1764  ;;  %vm1369_vm1 = vweird.f32 %v1763_v55 }
 0x50a   :  { %v1341_v1 = vsel %vm1340_vm13, %v1759_v59, %v1337_v54  ;;  %vm1370_vm3 = vmor %vm1368_vm2, %vm1369_vm1  ;;  %v3750_v59 = vld [vmem:[#allocation53_spill] sm:$0xff] }
 0x50b   :  { %v1365_v10 = vsub.f32 1.0, %v1364_v2  ;;  %v1346_v7 = vsel %vm1343_vm15, %v1345_v63, %v1341_v1  ;;  %v1356_v5 = vsel %vm1355_vm14, %v1761_v30, %v1352_v60  ;;  %v3751_v63 = vld [vmem:[#allocation54_spill] sm:$0xff] }
 0x50c   :  { %v1361_v4 = vsel %vm1358_vm0, %v1360_v62, %v1356_v5  ;;  %v1380_v20 = vmul.f32 %v1765_v3, %v1346_v7 }
 0x50d   :  { %v1366_v21 = vmul.f32 %v1763_v55, %v1365_v10  ;;  %v1379_v18 = vmul.f32 %v1361_v4, %v3343_v9 }
 0x50f   :  { %v1381_v11 = vadd.f32 %v1380_v20, %v1379_v18  ;;  %v1367_v35 = vadd.f32 %v1763_v55, %v1366_v21 }
 0x511   :  { %1766 = vtanh.f32 %v1381_v11  ;;  %v1387_v15 = vsub.f32 %v1381_v11, %v3343_v9  ;;  %v1371_v23 = vsel %vm1370_vm3, %v1763_v55, %v1367_v35  ;;  %v1541_v55 = vld [vmem:[%s3443_s5] sm:$0xff] }
 0x512   :  { %v1376_v12 = vsel %vm1373_vm4, %v1375_v14, %v1371_v23 }
 0x513   :  { %v1388_v61 = vmul.f32 %v1387_v15, %v319_v6 }
 0x515   :  { %v3363_v48 = vadd.f32 %v1388_v61, %v3343_v9  ;;  %v1556_v9 = vld [vmem:[%s3443_s5 + $0x78] sm:$0xff] }
 0x516   :  { %1561 = vmatpush.msrb.mxu0 %v1556_v9 }
 0x517   :  { %v1767_v16 = vpop.eup %1766 }
 0x518   :  { %v1383_v8 = vmul.f32 %v1767_v16, %v1376_v12  ;;  %1562 = vmatpush.msrb.mxu0 %v1555_v19 }
 0x51a   :  { %v1384_v0 = vsub.f32 %v1383_v8, %v3347_v57 }
 0x51c   :  { %v1385_v33 = vmul.f32 %v1384_v0, %v319_v6 }
 0x51e   :  { %v3367_v22 = vadd.f32 %v1385_v33, %v3347_v57  ;;  %v1554_v57 = vld [vmem:[%s3443_s5 + $0x68] sm:$0xff] }
 0x51f   :  { %1563 = vmatpush.msrb.mxu0 %v1554_v57 }
 0x520   :  { %1406 = vmatmul.f32.vlgmr.msra.gmra.mxu0 %v3367_v22  ;;  %1426 = vmatmul.f32.vlgmr.msrb.gmra.mxu1 %v3367_v22 }
 0x521   :  { %1446 = vmatmul.f32.vlgmr.msrb.gmra.mxu2 %v3367_v22  ;;  %1466 = vmatmul.f32.vlgmr.msrb.gmra.mxu3 %v3367_v22 }
 0x522   :  { %1564 = vmatpush.msrb.mxu0 %v1553_v24 }
 0x524   :  { %1565 = vmatpush.msrb.mxu0 %v1552_v25 }
 0x526   :  { %1566 = vmatpush.msrb.mxu0 %v1551_v28 }
 0x528   :  { %1567 = vmatpush.msrb.mxu0 %v1550_v46 }
 0x52a   :  { %1568 = vmatpush.msrb.mxu0 %v1549_v51  ;;  %v1655_v51 = vld [vmem:[%s3442_s6] ss:$0 sm:$0xff] }
 0x52c   :  { %1569 = vmatpush.msrb.mxu0 %v1548_v31 }
 0x52e   :  { %1570 = vmatpush.msrb.mxu0 %v1547_v36 }
 0x530   :  { %1571 = vmatpush.msrb.mxu0 %v1546_v41 }
 0x532   :  { %1572 = vmatpush.msrb.mxu0 %v1545_v42 }
 0x534   :  { %1573 = vmatpush.msrb.mxu0 %v1544_v37 }
 0x536   :  { %1574 = vmatpush.msrb.mxu0 %v1543_v58 }
 0x538   :  { %1575 = vmatpush.msrb.mxu0 %v1542_v34 }
 0x53a   :  { %1576 = vmatpush.msrb.mxu0 %v1541_v55 }
 0x59d   :  { %v1407_v26 = vpop.f32.mrf.mxu0  ;;  %v1427_v27 = vpop.f32.mrf.mxu1 }
 0x59e   :  { %v1470_v29 = vadd.f32 %v1407_v26, %v3748_v39  ;;  %v1471_v32 = vadd.f32 %v1427_v27, %v3749_v43 }
 0x5a0   :  { %v1639_v40 = vmul.f32 -1.442695, %v1470_v29  ;;  %v1640_v44 = vmul.f32 -1.442695, %v1471_v32  ;;  %v320_v32 = vld [vmem:[%s3441_s1 + $0x38] sm:$0xff] }
 0x5a2   :  { %1768 = vpow2.f32 %v1639_v40 }
 0x5a3   :  { %1770 = vpow2.f32 %v1640_v44 }
 0x5a4   :  { %v1447_v52 = vpop.f32.mrf.mxu2  ;;  %v1467_v49 = vpop.f32.mrf.mxu3 }
 0x5a5   :  { %v1472_v50 = vadd.f32 %v1447_v52, %v3750_v59  ;;  %v1473_v60 = vadd.f32 %v1467_v49, %v3751_v63 }
 0x5a7   :  { %v1641_v30 = vmul.f32 -1.442695, %v1472_v50 }
 0x5a8   :  { %v1769_v56 = vpop.eup %1768 }
 0x5a9   :  { %v1771_v45 = vpop.eup %1770  ;;  %v1483_v47 = vadd.f32 1.0, %v1769_v56  ;;  %1772 = vpow2.f32 %v1641_v30 }
 0x5aa   :  { %v1484_v53 = vadd.f32 1.0, %v1771_v45 }
 0x5ab   :  { %1774 = vrcp.f32 %v1483_v47  ;;  %v1497_v5 = vand.u32 2147483648, %v1483_v47  ;;  %v1495_v21 = vand.u32 2147483647, %v1483_v47  ;;  %vm1491_vm7 = vweird.f32 %v1483_v47 }
 0x5ac   :  { %1776 = vrcp.f32 %v1484_v53  ;;  %v1512_v4 = vand.u32 2147483648, %v1484_v53  ;;  %v1510_v11 = vand.u32 2147483647, %v1484_v53  ;;  %vm1506_vm8 = vweird.f32 %v1484_v53 }
 0x5ad   :  { %v1498_v15 = vor.u32 1.1754944e-38, %v1497_v5  ;;  %vm1496_vm11 = vcmp.eq.f32.partialorder %v1495_v21, 8.507059e+37 }
 0x5ae   :  { %v1513_v61 = vor.u32 1.1754944e-38, %v1512_v4  ;;  %vm1511_vm12 = vcmp.eq.f32.partialorder %v1510_v11, 8.507059e+37 }
 0x5af   :  { %v1773_v38 = vpop.eup %1772 }
 0x5b0   :  { %v1485_v54 = vadd.f32 1.0, %v1773_v38 }
 0x5b1   :  { %v1775_v2 = vpop.eup %1774 }
 0x5b2   :  { %v1777_v62 = vpop.eup %1776  ;;  %v1487_v1 = vmul.f32 %v1775_v2, %v1483_v47  ;;  %1778 = vrcp.f32 %v1485_v54  ;;  %vm1492_vm5 = vweird.f32 %v1775_v2  ;;  %v1527_v25 = vand.u32 2147483648, %v1485_v54 }
 0x5b3   :  { %v1502_v3 = vmul.f32 %v1777_v62, %v1484_v53  ;;  %1780 = vtanh.f32 %v1473_v60  ;;  %vm1507_vm6 = vweird.f32 %v1777_v62  ;;  %vm1493_vm9 = vmor %vm1491_vm7, %vm1492_vm5  ;;  %vm1521_vm14 = vweird.f32 %v1485_v54 }
 0x5b4   :  { %v1488_v10 = vsub.f32 1.0, %v1487_v1  ;;  %vm1508_vm10 = vmor %vm1506_vm8, %vm1507_vm6  ;;  %v1525_v26 = vand.u32 2147483647, %v1485_v54  ;;  %v1528_v28 = vor.u32 1.1754944e-38, %v1527_v25 }
 0x5b5   :  { %v1503_v7 = vsub.f32 1.0, %v1502_v3 }
 0x5b6   :  { %v1489_v20 = vmul.f32 %v1775_v2, %v1488_v10  ;;  %vm1526_vm0 = vcmp.eq.f32.partialorder %v1525_v26, 8.507059e+37 }
 0x5b7   :  { %v1504_v18 = vmul.f32 %v1777_v62, %v1503_v7 }
 0x5b8   :  { %v1779_v35 = vpop.eup %1778  ;;  %v1490_v6 = vadd.f32 %v1775_v2, %v1489_v20 }
 0x5b9   :  { %v1517_v17 = vmul.f32 %v1779_v35, %v1485_v54  ;;  %v1505_v13 = vadd.f32 %v1777_v62, %v1504_v18  ;;  %v1781_v14 = vpop.eup %1780  ;;  %vm1522_vm13 = vweird.f32 %v1779_v35 }
 0x5ba   :  { %v1494_v23 = vsel %vm1493_vm9, %v1775_v2, %v1490_v6  ;;  %vm1523_vm15 = vmor %vm1521_vm14, %vm1522_vm13 }
 0x5bb   :  { %v1518_v16 = vsub.f32 1.0, %v1517_v17  ;;  %v1499_v12 = vsel %vm1496_vm11, %v1498_v15, %v1494_v23  ;;  %v1509_v8 = vsel %vm1508_vm10, %v1777_v62, %v1505_v13 }
 0x5bc   :  { %v1514_v0 = vsel %vm1511_vm12, %v1513_v61, %v1509_v8  ;;  %v1533_v33 = vmul.f32 %v1781_v14, %v1499_v12 }
 0x5bd   :  { %v1519_v9 = vmul.f32 %v1779_v35, %v1518_v16  ;;  %v1532_v19 = vmul.f32 %v1514_v0, %v3363_v48 }
 0x5bf   :  { %v1534_v57 = vadd.f32 %v1533_v33, %v1532_v19  ;;  %v1520_v24 = vadd.f32 %v1779_v35, %v1519_v9 }
 0x5c1   :  { %1782 = vtanh.f32 %v1534_v57  ;;  %v1524_v27 = vsel %vm1523_vm15, %v1779_v35, %v1520_v24 }
 0x5c2   :  { %v1529_v29 = vsel %vm1526_vm0, %v1528_v28, %v1524_v27 }
 0x5c7   :  { %v1783_v39 = vpop.eup %1782 }
 0x5c8   :  { %v1536_v43 = vmul.f32 %v1783_v39, %v1529_v29 }
 0x5ca   :  { %v1537_v48 = vsub.f32 %v1536_v43, %v3367_v22 }
 0x5cc   :  { %v1538_v46 = vmul.f32 %v1537_v48, %v320_v32 }
 0x5ce   :  { %v1539_v40 = vadd.f32 %v1538_v46, %v3367_v22 }
 0x5d0   :  { %v1540_v44 = vmax.f32 %v1539_v40, 0.0 }
 0x5d2   :  { %1577 = vmatmul.f32.vlgmr.msrb.gmra.mxu0 %v1540_v44 }
 0x64f   :  { %v1578_v31 = vpop.f32.mrf.mxu0 }
 0x650   :  { %v1579_v36 = vadd.f32 %v1655_v51, %v1578_v31 }
 0x652   :  { %1581 = vst [vmem:[%s3444_s7] sm:$0xff] %v1579_v36 }

</bundles_post_ra>
